<compile_context>
chip_gen: v6e
topology: v6e:2x2x1
jax: 0.10.0
libtpu: 0.0.40
codegen_flags: <defaults>
</compile_context>

<pallas_src>
import functools

import numpy as np

import jax
import jax.numpy as jnp
from jax import lax
from jax.experimental import pallas as pl
from jax.experimental.pallas import tpu as pltpu


# ----------------------------------------------------------------------------
# Fused forward kernel (TB images per grid step)
# ----------------------------------------------------------------------------
def _lenet5_kernel(xs_ref, w1c_ref, b1_ref, w2c_ref, b2_ref,
                   f1w_ref, f1b_ref, f2w_ref, f2b_ref, f3w_ref, f3b_ref,
                   out_ref, *, tb):
    f32 = jnp.float32
    dot = functools.partial(jnp.dot, preferred_element_type=f32)

    def max4(a, b, c, d):
        return jnp.maximum(jnp.maximum(a, b), jnp.maximum(c, d))

    relu = lambda v: jnp.maximum(v, 0.0)

    # ---- Stage 1: conv1 (1->6, 5x5) + bias + ReLU + 2x2 max-pool ------------
    # xs_ref[s] : (6*TB, 140) rows = t*TB + b (conv row i = 4t + s), lanes =
    # kh*28 + image column.  One dot per phase; result lanes [0,128) = even
    # conv columns (jj*6 + co), [128,256) = odd conv columns.
    c0 = dot(xs_ref[0], w1c_ref[...])          # conv rows 4t
    c1 = dot(xs_ref[1], w1c_ref[...])          # conv rows 4t+1
    c2 = dot(xs_ref[2], w1c_ref[...])          # conv rows 4t+2
    c3 = dot(xs_ref[3], w1c_ref[...])          # conv rows 4t+3
    b1 = b1_ref[...]
    # pooled1 rows: even ii=2t from {4t,4t+1}, odd ii=2t+1 from {4t+2,4t+3}.
    # p1*[t*TB + b, jj*6 + ci] = pooled1[b][ci, ii, jj]   (lanes 72..127 = 0)
    p1e = relu(max4(c0[:, :128], c0[:, 128:], c1[:, :128], c1[:, 128:]) + b1)
    p1o = relu(max4(c2[:, :128], c2[:, 128:], c3[:, :128], c3[:, 128:]) + b1)

    # ---- Stage 2: conv2 (6->16, 5x5) + bias + ReLU + 2x2 max-pool -----------
    # For conv row i2 = 2pp (+1), pooled1 row i2+kh lives in p1e/p1o at
    # t = pp + shift; row-major/batch-minor layout makes the per-kh LHS a
    # contiguous (4*TB, 128) sublane slice at offset shift*TB.
    a_e = jnp.zeros((4 * tb, 256), f32)        # even conv rows i2 = 2pp
    a_o = jnp.zeros((4 * tb, 256), f32)        # odd  conv rows i2 = 2pp+1
    for kh in range(5):
        se = kh // 2                           # shift for even conv rows
        so = (kh + 1) // 2                     # shift for odd  conv rows
        src_e = p1e if kh % 2 == 0 else p1o
        src_o = p1o if kh % 2 == 0 else p1e
        a_e = a_e + dot(src_e[se * tb:(se + 4) * tb, :], w2c_ref[kh])
        a_o = a_o + dot(src_o[so * tb:(so + 4) * tb, :], w2c_ref[kh])
    # p2[pp*TB + b, qq*16 + co2] = pooled2[b][co2, pp, qq]   (lanes 64..127 = 0)
    p2 = relu(max4(a_e[:, :128], a_e[:, 128:], a_o[:, :128], a_o[:, 128:])
              + b2_ref[...])

    # ---- Stage 3: fc1 -> ReLU -> fc2 -> ReLU -> fc3  (M = TB) ---------------
    h = dot(p2[0:tb, :], f1w_ref[0])
    for pp in range(1, 4):
        h = h + dot(p2[pp * tb:(pp + 1) * tb, :], f1w_ref[pp])
    h = relu(h + f1b_ref[...])                                   # (TB, 120)
    h = relu(dot(h, f2w_ref[...]) + f2b_ref[...])                # (TB, 84)
    out_ref[...] = dot(h, f3w_ref[...]) + f3b_ref[...]           # (TB, 10)


# ----------------------------------------------------------------------------
# Wrapper: one pallas_call, batch-blocked grid
# ----------------------------------------------------------------------------
def lenet5_forward(kp, x, tb=8):
    """x: (B, 1, 28, 28) float32 NCHW; kp: output of prepare_params()."""
    if tb % 8 != 0:
        raise ValueError("tb must be a multiple of 8 for aligned sublane slices")
    B = x.shape[0]
    g = pl.cdiv(B, tb)
    bp = g * tb
    if bp != B:                                # pad batch to a multiple of tb
        x = jnp.concatenate(
            [x, jnp.zeros((bp - B,) + x.shape[1:], x.dtype)], axis=0)

    # Pre-pack the conv1 LHS (K-folded over kh, row-major / batch-minor):
    #   xs[gi, s, t*tb + b, kh*28 + c] = x[gi*tb + b, 0, 4t + s + kh, c]
    row_idx = (np.arange(4)[:, None, None]
               + 4 * np.arange(6)[None, :, None]
               + np.arange(5)[None, None, :])              # (4, 6, 5), <= 27
    xs = x[:, 0][:, row_idx, :]                             # (bp, 4, 6, 5, 28)
    xs = xs.reshape(bp, 4, 6, 140)
    xs = (xs.reshape(g, tb, 4, 6, 140)
            .transpose(0, 2, 3, 1, 4)
            .reshape(g, 4, 6 * tb, 140))

    def const_spec(shape):
        n = len(shape)
        return pl.BlockSpec(shape, lambda i, n=n: (0,) * n)

    grid_spec = pltpu.PrefetchScalarGridSpec(
        num_scalar_prefetch=0,
        grid=(g,),
        in_specs=[
            pl.BlockSpec((None, 4, 6 * tb, 140), lambda i: (i, 0, 0, 0)),
            const_spec((140, 256)),   const_spec((1, 128)),     # conv1 bands+bias
            const_spec((5, 128, 256)), const_spec((1, 128)),    # conv2 bands+bias
            const_spec((4, 128, 120)), const_spec((1, 120)),    # fc1
            const_spec((120, 84)),    const_spec((1, 84)),      # fc2
            const_spec((84, 10)),     const_spec((1, 10)),      # fc3
        ],
        out_specs=pl.BlockSpec((tb, 10), lambda i: (i, 0)),
    )
    out = pl.pallas_call(
        functools.partial(_lenet5_kernel, tb=tb),
        out_shape=jax.ShapeDtypeStruct((bp, 10), jnp.float32),
        grid_spec=grid_spec,
        compiler_params=pltpu.CompilerParams(
            dimension_semantics=("parallel",)),   # v7x: 2 TCs split the grid
    )(xs, kp["w1cat"], kp["b1e"], kp["w2cat"], kp["b2e"],
      kp["fc1w"], kp["fc1b"], kp["fc2w"], kp["fc2b"], kp["fc3w"], kp["fc3b"])
    return out[:B]


# ----------------------------------------------------------------------------
# Parameters (torch layout) and one-time repack into kernel operands
# ----------------------------------------------------------------------------
def init_params(key):
    """Deterministic params mimicking torch's default uniform(+-1/sqrt(fan_in))."""
    def u(k, shape, fan_in):
        bound = 1.0 / jnp.sqrt(float(fan_in))
        return jax.random.uniform(k, shape, jnp.float32, -bound, bound)

    ks = jax.random.split(key, 10)
    return {
        "w1": u(ks[0], (6, 1, 5, 5), 1 * 5 * 5),
        "b1": u(ks[1], (6,), 1 * 5 * 5),
        "w2": u(ks[2], (16, 6, 5, 5), 6 * 5 * 5),
        "b2": u(ks[3], (16,), 6 * 5 * 5),
        "fc1_w": u(ks[4], (120, 256), 256),
        "fc1_b": u(ks[5], (120,), 256),
        "fc2_w": u(ks[6], (84, 120), 120),
        "fc2_b": u(ks[7], (84,), 120),
        "fc3_w": u(ks[8], (10, 84), 84),
        "fc3_b": u(ks[9], (10,), 84),
    }


def prepare_params(p):
    """One-time repack of torch-layout parameters into kernel operands.

    conv1 band (140, 256), K = kh*28 + image column:
        w1cat[kh*28 + 2jj     + kw,       jj*6 + co] = w1[co, 0, kh, kw]  (even cols)
        w1cat[kh*28 + 2jj + 1 + kw, 128 + jj*6 + co] = w1[co, 0, kh, kw]  (odd  cols)
    conv2 bands (5, 128, 256), K = jj*6 + ci over pooled1 lanes:
        w2cat[kh, (2qq     + kw)*6 + ci,       qq*16 + co2] = w2[co2, ci, kh, kw]
        w2cat[kh, (2qq + 1 + kw)*6 + ci, 128 + qq*16 + co2] = w2[co2, ci, kh, kw]
    fc1 is permuted to the kernel's (pp, qq*16+co2) activation layout (rows
    64..127 zero); fc2/fc3 are pre-transposed; biases lane-expanded & zero-padded.
    """
    w1 = np.asarray(p["w1"], np.float32)
    b1 = np.asarray(p["b1"], np.float32)
    w2 = np.asarray(p["w2"], np.float32)
    b2 = np.asarray(p["b2"], np.float32)

    w1cat = np.zeros((140, 256), np.float32)
    for kh in range(5):
        for kw in range(5):
            for jj in range(12):
                w1cat[kh * 28 + 2 * jj + kw, jj * 6:(jj + 1) * 6] = w1[:, 0, kh, kw]
                w1cat[kh * 28 + 2 * jj + 1 + kw,
                      128 + jj * 6:128 + (jj + 1) * 6] = w1[:, 0, kh, kw]

    w2cat = np.zeros((5, 128, 256), np.float32)
    for kh in range(5):
        for kw in range(5):
            for qq in range(4):
                for ci in range(6):
                    w2cat[kh, (2 * qq + kw) * 6 + ci,
                          qq * 16:(qq + 1) * 16] = w2[:, ci, kh, kw]
                    w2cat[kh, (2 * qq + 1 + kw) * 6 + ci,
                          128 + qq * 16:128 + (qq + 1) * 16] = w2[:, ci, kh, kw]

    fc1_w = np.asarray(p["fc1_w"], np.float32).reshape(120, 16, 4, 4)  # (n,co2,pp,qq)
    fc1w = np.zeros((4, 128, 120), np.float32)
    fc1w[:, :64, :] = fc1_w.transpose(2, 3, 1, 0).reshape(4, 64, 120)  # (pp,qq*16+co2,n)

    b1e = np.zeros((1, 128), np.float32)
    b1e[0, :72] = np.tile(b1, 12)
    b2e = np.zeros((1, 128), np.float32)
    b2e[0, :64] = np.tile(b2, 4)

    return {
        "w1cat": jnp.asarray(w1cat), "b1e": jnp.asarray(b1e),
        "w2cat": jnp.asarray(w2cat), "b2e": jnp.asarray(b2e),
        "fc1w": jnp.asarray(fc1w),
        "fc1b": jnp.asarray(p["fc1_b"]).reshape(1, 120),
        "fc2w": jnp.asarray(p["fc2_w"]).T,
        "fc2b": jnp.asarray(p["fc2_b"]).reshape(1, 84),
        "fc3w": jnp.asarray(p["fc3_w"]).T,
        "fc3b": jnp.asarray(p["fc3_b"]).reshape(1, 10),
    }


# ----------------------------------------------------------------------------
# Pure-JAX reference (mirrors the PyTorch module)
# ----------------------------------------------------------------------------
def lenet5_reference(p, x):
    y = lax.conv_general_dilated(x, p["w1"], (1, 1), "VALID",
                                 dimension_numbers=("NCHW", "OIHW", "NCHW"))
    y = jax.nn.relu(y + p["b1"].reshape(1, 6, 1, 1))
    y = y.reshape(y.shape[0], 6, 12, 2, 12, 2).max(axis=(3, 5))
    y = lax.conv_general_dilated(y, p["w2"], (1, 1), "VALID",
                                 dimension_numbers=("NCHW", "OIHW", "NCHW"))
    y = jax.nn.relu(y + p["b2"].reshape(1, 16, 1, 1))
    y = y.reshape(y.shape[0], 16, 4, 2, 4, 2).max(axis=(3, 5))
    y = y.reshape(y.shape[0], 256)
    y = jax.nn.relu(y @ p["fc1_w"].T + p["fc1_b"])
    y = jax.nn.relu(y @ p["fc2_w"].T + p["fc2_b"])
    return y @ p["fc3_w"].T + p["fc3_b"]


if __name__ == "__main__":
    key = jax.random.PRNGKey(0)
    k_params, k_x = jax.random.split(key)
    params = init_params(k_params)        # torch-layout parameters
    kparams = prepare_params(params)      # one-time repack for the fused kernel

    # FashionMNIST input: batch=16 (2 grid steps of TB=8), 1x28x28, NCHW.
    B = 16
    x = jax.random.normal(k_x, (B, 1, 28, 28), dtype=jnp.float32)

    fwd = jax.jit(lenet5_forward, static_argnames=("tb",))
    out = jax.block_until_ready(fwd(kparams, x))
    assert out.shape == (B, 10) and out.dtype == jnp.float32

    ref = jax.block_until_ready(lenet5_reference(params, x))
    err = float(jnp.max(jnp.abs(out - ref)))
    assert err < 2e-2, f"kernel/reference mismatch: max abs err = {err}"
    print("KERNEL_OK")
</pallas_src>

<mosaic_0001>
module attributes {stable_mosaic.version = 11 : i64} {
  func.func @_lenet5_kernel(%arg0: i32, %arg1: memref<1x4x48x140xf32, #tpu.memory_space<vmem>>, %arg2: memref<140x256xf32, #tpu.memory_space<vmem>>, %arg3: memref<1x128xf32, #tpu.memory_space<vmem>>, %arg4: memref<5x128x256xf32, #tpu.memory_space<vmem>>, %arg5: memref<1x128xf32, #tpu.memory_space<vmem>>, %arg6: memref<4x128x120xf32, #tpu.memory_space<vmem>>, %arg7: memref<1x120xf32, #tpu.memory_space<vmem>>, %arg8: memref<120x84xf32, #tpu.memory_space<vmem>>, %arg9: memref<1x84xf32, #tpu.memory_space<vmem>>, %arg10: memref<84x10xf32, #tpu.memory_space<vmem>>, %arg11: memref<1x10xf32, #tpu.memory_space<vmem>>, %arg12: memref<8x10xf32, #tpu.memory_space<vmem>>) attributes {dimension_semantics = [#tpu.dimension_semantics<parallel>], iteration_bounds = array<i64: 2>, scalar_prefetch = 0 : i64, scratch_operands = 0 : i64, tpu.core_type = #tpu.core_type<tc>, window_params = [{transform_indices = @transform_0, window_bounds = array<i64: 1, 4, 48, 140>}, {pipeline_mode = #tpu.pipeline_mode<synchronous>, transform_indices = @transform_1, window_bounds = array<i64: 140, 256>}, {pipeline_mode = #tpu.pipeline_mode<synchronous>, transform_indices = @transform_2, window_bounds = array<i64: 1, 128>}, {pipeline_mode = #tpu.pipeline_mode<synchronous>, transform_indices = @transform_3, window_bounds = array<i64: 5, 128, 256>}, {pipeline_mode = #tpu.pipeline_mode<synchronous>, transform_indices = @transform_4, window_bounds = array<i64: 1, 128>}, {pipeline_mode = #tpu.pipeline_mode<synchronous>, transform_indices = @transform_5, window_bounds = array<i64: 4, 128, 120>}, {pipeline_mode = #tpu.pipeline_mode<synchronous>, transform_indices = @transform_6, window_bounds = array<i64: 1, 120>}, {pipeline_mode = #tpu.pipeline_mode<synchronous>, transform_indices = @transform_7, window_bounds = array<i64: 120, 84>}, {pipeline_mode = #tpu.pipeline_mode<synchronous>, transform_indices = @transform_8, window_bounds = array<i64: 1, 84>}, {pipeline_mode = #tpu.pipeline_mode<synchronous>, transform_indices = @transform_9, window_bounds = array<i64: 84, 10>}, {pipeline_mode = #tpu.pipeline_mode<synchronous>, transform_indices = @transform_10, window_bounds = array<i64: 1, 10>}, {transform_indices = @transform_11, window_bounds = array<i64: 8, 10>}]} {
    %c0 = arith.constant 0 : index
    %c0_0 = arith.constant 0 : index
    %c0_1 = arith.constant 0 : index
    %c0_2 = arith.constant 0 : index
    %0 = vector.load %arg1[%c0, %c0_0, %c0_1, %c0_2] : memref<1x4x48x140xf32, #tpu.memory_space<vmem>>, vector<1x1x48x140xf32>
    %1 = vector.shape_cast %0 : vector<1x1x48x140xf32> to vector<48x140xf32>
    %c0_3 = arith.constant 0 : index
    %c0_4 = arith.constant 0 : index
    %2 = vector.load %arg2[%c0_3, %c0_4] : memref<140x256xf32, #tpu.memory_space<vmem>>, vector<140x256xf32>
    %cst = arith.constant dense<0.000000e+00> : vector<48x256xf32>
    %3 = tpu.matmul %1, %2, %cst {dimension_numbers = #tpu.dot_dimension_numbers<[1], [0], [0], [1], [0, 0, 1, 1], [], []>} : vector<48x140xf32>, vector<140x256xf32>, vector<48x256xf32> -> vector<48x256xf32>
    %c0_5 = arith.constant 0 : index
    %c1 = arith.constant 1 : index
    %c0_6 = arith.constant 0 : index
    %c0_7 = arith.constant 0 : index
    %4 = vector.load %arg1[%c0_5, %c1, %c0_6, %c0_7] : memref<1x4x48x140xf32, #tpu.memory_space<vmem>>, vector<1x1x48x140xf32>
    %5 = vector.shape_cast %4 : vector<1x1x48x140xf32> to vector<48x140xf32>
    %c0_8 = arith.constant 0 : index
    %c0_9 = arith.constant 0 : index
    %6 = vector.load %arg2[%c0_8, %c0_9] : memref<140x256xf32, #tpu.memory_space<vmem>>, vector<140x256xf32>
    %cst_10 = arith.constant dense<0.000000e+00> : vector<48x256xf32>
    %7 = tpu.matmul %5, %6, %cst_10 {dimension_numbers = #tpu.dot_dimension_numbers<[1], [0], [0], [1], [0, 0, 1, 1], [], []>} : vector<48x140xf32>, vector<140x256xf32>, vector<48x256xf32> -> vector<48x256xf32>
    %c0_11 = arith.constant 0 : index
    %c2 = arith.constant 2 : index
    %c0_12 = arith.constant 0 : index
    %c0_13 = arith.constant 0 : index
    %8 = vector.load %arg1[%c0_11, %c2, %c0_12, %c0_13] : memref<1x4x48x140xf32, #tpu.memory_space<vmem>>, vector<1x1x48x140xf32>
    %9 = vector.shape_cast %8 : vector<1x1x48x140xf32> to vector<48x140xf32>
    %c0_14 = arith.constant 0 : index
    %c0_15 = arith.constant 0 : index
    %10 = vector.load %arg2[%c0_14, %c0_15] : memref<140x256xf32, #tpu.memory_space<vmem>>, vector<140x256xf32>
    %cst_16 = arith.constant dense<0.000000e+00> : vector<48x256xf32>
    %11 = tpu.matmul %9, %10, %cst_16 {dimension_numbers = #tpu.dot_dimension_numbers<[1], [0], [0], [1], [0, 0, 1, 1], [], []>} : vector<48x140xf32>, vector<140x256xf32>, vector<48x256xf32> -> vector<48x256xf32>
    %c0_17 = arith.constant 0 : index
    %c3 = arith.constant 3 : index
    %c0_18 = arith.constant 0 : index
    %c0_19 = arith.constant 0 : index
    %12 = vector.load %arg1[%c0_17, %c3, %c0_18, %c0_19] : memref<1x4x48x140xf32, #tpu.memory_space<vmem>>, vector<1x1x48x140xf32>
    %13 = vector.shape_cast %12 : vector<1x1x48x140xf32> to vector<48x140xf32>
    %c0_20 = arith.constant 0 : index
    %c0_21 = arith.constant 0 : index
    %14 = vector.load %arg2[%c0_20, %c0_21] : memref<140x256xf32, #tpu.memory_space<vmem>>, vector<140x256xf32>
    %cst_22 = arith.constant dense<0.000000e+00> : vector<48x256xf32>
    %15 = tpu.matmul %13, %14, %cst_22 {dimension_numbers = #tpu.dot_dimension_numbers<[1], [0], [0], [1], [0, 0, 1, 1], [], []>} : vector<48x140xf32>, vector<140x256xf32>, vector<48x256xf32> -> vector<48x256xf32>
    %c0_23 = arith.constant 0 : index
    %c0_24 = arith.constant 0 : index
    %16 = vector.load %arg3[%c0_23, %c0_24] : memref<1x128xf32, #tpu.memory_space<vmem>>, vector<1x128xf32>
    %17 = vector.extract_strided_slice %3 {offsets = [0, 0], sizes = [48, 128], strides = [1, 1]} : vector<48x256xf32> to vector<48x128xf32>
    %18 = vector.extract_strided_slice %3 {offsets = [0, 128], sizes = [48, 128], strides = [1, 1]} : vector<48x256xf32> to vector<48x128xf32>
    %19 = vector.extract_strided_slice %7 {offsets = [0, 0], sizes = [48, 128], strides = [1, 1]} : vector<48x256xf32> to vector<48x128xf32>
    %20 = vector.extract_strided_slice %7 {offsets = [0, 128], sizes = [48, 128], strides = [1, 1]} : vector<48x256xf32> to vector<48x128xf32>
    %21 = arith.maximumf %17, %18 : vector<48x128xf32>
    %22 = arith.maximumf %19, %20 : vector<48x128xf32>
    %23 = arith.maximumf %21, %22 : vector<48x128xf32>
    %24 = vector.broadcast %16 : vector<1x128xf32> to vector<48x128xf32>
    %25 = arith.addf %23, %24 : vector<48x128xf32>
    %cst_25 = arith.constant 0.000000e+00 : f32
    %26 = vector.broadcast %cst_25 : f32 to vector<48x128xf32>
    %27 = arith.maximumf %25, %26 : vector<48x128xf32>
    %28 = vector.extract_strided_slice %11 {offsets = [0, 0], sizes = [48, 128], strides = [1, 1]} : vector<48x256xf32> to vector<48x128xf32>
    %29 = vector.extract_strided_slice %11 {offsets = [0, 128], sizes = [48, 128], strides = [1, 1]} : vector<48x256xf32> to vector<48x128xf32>
    %30 = vector.extract_strided_slice %15 {offsets = [0, 0], sizes = [48, 128], strides = [1, 1]} : vector<48x256xf32> to vector<48x128xf32>
    %31 = vector.extract_strided_slice %15 {offsets = [0, 128], sizes = [48, 128], strides = [1, 1]} : vector<48x256xf32> to vector<48x128xf32>
    %32 = arith.maximumf %28, %29 : vector<48x128xf32>
    %33 = arith.maximumf %30, %31 : vector<48x128xf32>
    %34 = arith.maximumf %32, %33 : vector<48x128xf32>
    %35 = vector.broadcast %16 : vector<1x128xf32> to vector<48x128xf32>
    %36 = arith.addf %34, %35 : vector<48x128xf32>
    %cst_26 = arith.constant 0.000000e+00 : f32
    %37 = vector.broadcast %cst_26 : f32 to vector<48x128xf32>
    %38 = arith.maximumf %36, %37 : vector<48x128xf32>
    %cst_27 = arith.constant 0.000000e+00 : f32
    %39 = vector.broadcast %cst_27 : f32 to vector<32x256xf32>
    %cst_28 = arith.constant 0.000000e+00 : f32
    %40 = vector.broadcast %cst_28 : f32 to vector<32x256xf32>
    %41 = vector.extract_strided_slice %27 {offsets = [0, 0], sizes = [32, 128], strides = [1, 1]} : vector<48x128xf32> to vector<32x128xf32>
    %c0_29 = arith.constant 0 : index
    %c0_30 = arith.constant 0 : index
    %c0_31 = arith.constant 0 : index
    %42 = vector.load %arg4[%c0_29, %c0_30, %c0_31] : memref<5x128x256xf32, #tpu.memory_space<vmem>>, vector<1x128x256xf32>
    %43 = vector.shape_cast %42 : vector<1x128x256xf32> to vector<128x256xf32>
    %cst_32 = arith.constant dense<0.000000e+00> : vector<32x256xf32>
    %44 = tpu.matmul %41, %43, %cst_32 {dimension_numbers = #tpu.dot_dimension_numbers<[1], [0], [0], [1], [0, 0, 1, 1], [], []>} : vector<32x128xf32>, vector<128x256xf32>, vector<32x256xf32> -> vector<32x256xf32>
    %45 = arith.addf %39, %44 : vector<32x256xf32>
    %46 = vector.extract_strided_slice %38 {offsets = [0, 0], sizes = [32, 128], strides = [1, 1]} : vector<48x128xf32> to vector<32x128xf32>
    %c0_33 = arith.constant 0 : index
    %c0_34 = arith.constant 0 : index
    %c0_35 = arith.constant 0 : index
    %47 = vector.load %arg4[%c0_33, %c0_34, %c0_35] : memref<5x128x256xf32, #tpu.memory_space<vmem>>, vector<1x128x256xf32>
    %48 = vector.shape_cast %47 : vector<1x128x256xf32> to vector<128x256xf32>
    %cst_36 = arith.constant dense<0.000000e+00> : vector<32x256xf32>
    %49 = tpu.matmul %46, %48, %cst_36 {dimension_numbers = #tpu.dot_dimension_numbers<[1], [0], [0], [1], [0, 0, 1, 1], [], []>} : vector<32x128xf32>, vector<128x256xf32>, vector<32x256xf32> -> vector<32x256xf32>
    %50 = arith.addf %40, %49 : vector<32x256xf32>
    %51 = vector.extract_strided_slice %38 {offsets = [0, 0], sizes = [32, 128], strides = [1, 1]} : vector<48x128xf32> to vector<32x128xf32>
    %c1_37 = arith.constant 1 : index
    %c0_38 = arith.constant 0 : index
    %c0_39 = arith.constant 0 : index
    %52 = vector.load %arg4[%c1_37, %c0_38, %c0_39] : memref<5x128x256xf32, #tpu.memory_space<vmem>>, vector<1x128x256xf32>
    %53 = vector.shape_cast %52 : vector<1x128x256xf32> to vector<128x256xf32>
    %cst_40 = arith.constant dense<0.000000e+00> : vector<32x256xf32>
    %54 = tpu.matmul %51, %53, %cst_40 {dimension_numbers = #tpu.dot_dimension_numbers<[1], [0], [0], [1], [0, 0, 1, 1], [], []>} : vector<32x128xf32>, vector<128x256xf32>, vector<32x256xf32> -> vector<32x256xf32>
    %55 = arith.addf %45, %54 : vector<32x256xf32>
    %56 = vector.extract_strided_slice %27 {offsets = [8, 0], sizes = [32, 128], strides = [1, 1]} : vector<48x128xf32> to vector<32x128xf32>
    %c1_41 = arith.constant 1 : index
    %c0_42 = arith.constant 0 : index
    %c0_43 = arith.constant 0 : index
    %57 = vector.load %arg4[%c1_41, %c0_42, %c0_43] : memref<5x128x256xf32, #tpu.memory_space<vmem>>, vector<1x128x256xf32>
    %58 = vector.shape_cast %57 : vector<1x128x256xf32> to vector<128x256xf32>
    %cst_44 = arith.constant dense<0.000000e+00> : vector<32x256xf32>
    %59 = tpu.matmul %56, %58, %cst_44 {dimension_numbers = #tpu.dot_dimension_numbers<[1], [0], [0], [1], [0, 0, 1, 1], [], []>} : vector<32x128xf32>, vector<128x256xf32>, vector<32x256xf32> -> vector<32x256xf32>
    %60 = arith.addf %50, %59 : vector<32x256xf32>
    %61 = vector.extract_strided_slice %27 {offsets = [8, 0], sizes = [32, 128], strides = [1, 1]} : vector<48x128xf32> to vector<32x128xf32>
    %c2_45 = arith.constant 2 : index
    %c0_46 = arith.constant 0 : index
    %c0_47 = arith.constant 0 : index
    %62 = vector.load %arg4[%c2_45, %c0_46, %c0_47] : memref<5x128x256xf32, #tpu.memory_space<vmem>>, vector<1x128x256xf32>
    %63 = vector.shape_cast %62 : vector<1x128x256xf32> to vector<128x256xf32>
    %cst_48 = arith.constant dense<0.000000e+00> : vector<32x256xf32>
    %64 = tpu.matmul %61, %63, %cst_48 {dimension_numbers = #tpu.dot_dimension_numbers<[1], [0], [0], [1], [0, 0, 1, 1], [], []>} : vector<32x128xf32>, vector<128x256xf32>, vector<32x256xf32> -> vector<32x256xf32>
    %65 = arith.addf %55, %64 : vector<32x256xf32>
    %66 = vector.extract_strided_slice %38 {offsets = [8, 0], sizes = [32, 128], strides = [1, 1]} : vector<48x128xf32> to vector<32x128xf32>
    %c2_49 = arith.constant 2 : index
    %c0_50 = arith.constant 0 : index
    %c0_51 = arith.constant 0 : index
    %67 = vector.load %arg4[%c2_49, %c0_50, %c0_51] : memref<5x128x256xf32, #tpu.memory_space<vmem>>, vector<1x128x256xf32>
    %68 = vector.shape_cast %67 : vector<1x128x256xf32> to vector<128x256xf32>
    %cst_52 = arith.constant dense<0.000000e+00> : vector<32x256xf32>
    %69 = tpu.matmul %66, %68, %cst_52 {dimension_numbers = #tpu.dot_dimension_numbers<[1], [0], [0], [1], [0, 0, 1, 1], [], []>} : vector<32x128xf32>, vector<128x256xf32>, vector<32x256xf32> -> vector<32x256xf32>
    %70 = arith.addf %60, %69 : vector<32x256xf32>
    %71 = vector.extract_strided_slice %38 {offsets = [8, 0], sizes = [32, 128], strides = [1, 1]} : vector<48x128xf32> to vector<32x128xf32>
    %c3_53 = arith.constant 3 : index
    %c0_54 = arith.constant 0 : index
    %c0_55 = arith.constant 0 : index
    %72 = vector.load %arg4[%c3_53, %c0_54, %c0_55] : memref<5x128x256xf32, #tpu.memory_space<vmem>>, vector<1x128x256xf32>
    %73 = vector.shape_cast %72 : vector<1x128x256xf32> to vector<128x256xf32>
    %cst_56 = arith.constant dense<0.000000e+00> : vector<32x256xf32>
    %74 = tpu.matmul %71, %73, %cst_56 {dimension_numbers = #tpu.dot_dimension_numbers<[1], [0], [0], [1], [0, 0, 1, 1], [], []>} : vector<32x128xf32>, vector<128x256xf32>, vector<32x256xf32> -> vector<32x256xf32>
    %75 = arith.addf %65, %74 : vector<32x256xf32>
    %76 = vector.extract_strided_slice %27 {offsets = [16, 0], sizes = [32, 128], strides = [1, 1]} : vector<48x128xf32> to vector<32x128xf32>
    %c3_57 = arith.constant 3 : index
    %c0_58 = arith.constant 0 : index
    %c0_59 = arith.constant 0 : index
    %77 = vector.load %arg4[%c3_57, %c0_58, %c0_59] : memref<5x128x256xf32, #tpu.memory_space<vmem>>, vector<1x128x256xf32>
    %78 = vector.shape_cast %77 : vector<1x128x256xf32> to vector<128x256xf32>
    %cst_60 = arith.constant dense<0.000000e+00> : vector<32x256xf32>
    %79 = tpu.matmul %76, %78, %cst_60 {dimension_numbers = #tpu.dot_dimension_numbers<[1], [0], [0], [1], [0, 0, 1, 1], [], []>} : vector<32x128xf32>, vector<128x256xf32>, vector<32x256xf32> -> vector<32x256xf32>
    %80 = arith.addf %70, %79 : vector<32x256xf32>
    %81 = vector.extract_strided_slice %27 {offsets = [16, 0], sizes = [32, 128], strides = [1, 1]} : vector<48x128xf32> to vector<32x128xf32>
    %c4 = arith.constant 4 : index
    %c0_61 = arith.constant 0 : index
    %c0_62 = arith.constant 0 : index
    %82 = vector.load %arg4[%c4, %c0_61, %c0_62] : memref<5x128x256xf32, #tpu.memory_space<vmem>>, vector<1x128x256xf32>
    %83 = vector.shape_cast %82 : vector<1x128x256xf32> to vector<128x256xf32>
    %cst_63 = arith.constant dense<0.000000e+00> : vector<32x256xf32>
    %84 = tpu.matmul %81, %83, %cst_63 {dimension_numbers = #tpu.dot_dimension_numbers<[1], [0], [0], [1], [0, 0, 1, 1], [], []>} : vector<32x128xf32>, vector<128x256xf32>, vector<32x256xf32> -> vector<32x256xf32>
    %85 = arith.addf %75, %84 : vector<32x256xf32>
    %86 = vector.extract_strided_slice %38 {offsets = [16, 0], sizes = [32, 128], strides = [1, 1]} : vector<48x128xf32> to vector<32x128xf32>
    %c4_64 = arith.constant 4 : index
    %c0_65 = arith.constant 0 : index
    %c0_66 = arith.constant 0 : index
    %87 = vector.load %arg4[%c4_64, %c0_65, %c0_66] : memref<5x128x256xf32, #tpu.memory_space<vmem>>, vector<1x128x256xf32>
    %88 = vector.shape_cast %87 : vector<1x128x256xf32> to vector<128x256xf32>
    %cst_67 = arith.constant dense<0.000000e+00> : vector<32x256xf32>
    %89 = tpu.matmul %86, %88, %cst_67 {dimension_numbers = #tpu.dot_dimension_numbers<[1], [0], [0], [1], [0, 0, 1, 1], [], []>} : vector<32x128xf32>, vector<128x256xf32>, vector<32x256xf32> -> vector<32x256xf32>
    %90 = arith.addf %80, %89 : vector<32x256xf32>
    %91 = vector.extract_strided_slice %85 {offsets = [0, 0], sizes = [32, 128], strides = [1, 1]} : vector<32x256xf32> to vector<32x128xf32>
    %92 = vector.extract_strided_slice %85 {offsets = [0, 128], sizes = [32, 128], strides = [1, 1]} : vector<32x256xf32> to vector<32x128xf32>
    %93 = vector.extract_strided_slice %90 {offsets = [0, 0], sizes = [32, 128], strides = [1, 1]} : vector<32x256xf32> to vector<32x128xf32>
    %94 = vector.extract_strided_slice %90 {offsets = [0, 128], sizes = [32, 128], strides = [1, 1]} : vector<32x256xf32> to vector<32x128xf32>
    %95 = arith.maximumf %91, %92 : vector<32x128xf32>
    %96 = arith.maximumf %93, %94 : vector<32x128xf32>
    %97 = arith.maximumf %95, %96 : vector<32x128xf32>
    %c0_68 = arith.constant 0 : index
    %c0_69 = arith.constant 0 : index
    %98 = vector.load %arg5[%c0_68, %c0_69] : memref<1x128xf32, #tpu.memory_space<vmem>>, vector<1x128xf32>
    %99 = vector.broadcast %98 : vector<1x128xf32> to vector<32x128xf32>
    %100 = arith.addf %97, %99 : vector<32x128xf32>
    %cst_70 = arith.constant 0.000000e+00 : f32
    %101 = vector.broadcast %cst_70 : f32 to vector<32x128xf32>
    %102 = arith.maximumf %100, %101 : vector<32x128xf32>
    %103 = vector.extract_strided_slice %102 {offsets = [0, 0], sizes = [8, 128], strides = [1, 1]} : vector<32x128xf32> to vector<8x128xf32>
    %c0_71 = arith.constant 0 : index
    %c0_72 = arith.constant 0 : index
    %c0_73 = arith.constant 0 : index
    %104 = vector.load %arg6[%c0_71, %c0_72, %c0_73] : memref<4x128x120xf32, #tpu.memory_space<vmem>>, vector<1x128x120xf32>
    %105 = vector.shape_cast %104 : vector<1x128x120xf32> to vector<128x120xf32>
    %cst_74 = arith.constant dense<0.000000e+00> : vector<8x120xf32>
    %106 = tpu.matmul %103, %105, %cst_74 {dimension_numbers = #tpu.dot_dimension_numbers<[1], [0], [0], [1], [0, 0, 1, 1], [], []>} : vector<8x128xf32>, vector<128x120xf32>, vector<8x120xf32> -> vector<8x120xf32>
    %107 = vector.extract_strided_slice %102 {offsets = [8, 0], sizes = [8, 128], strides = [1, 1]} : vector<32x128xf32> to vector<8x128xf32>
    %c1_75 = arith.constant 1 : index
    %c0_76 = arith.constant 0 : index
    %c0_77 = arith.constant 0 : index
    %108 = vector.load %arg6[%c1_75, %c0_76, %c0_77] : memref<4x128x120xf32, #tpu.memory_space<vmem>>, vector<1x128x120xf32>
    %109 = vector.shape_cast %108 : vector<1x128x120xf32> to vector<128x120xf32>
    %cst_78 = arith.constant dense<0.000000e+00> : vector<8x120xf32>
    %110 = tpu.matmul %107, %109, %cst_78 {dimension_numbers = #tpu.dot_dimension_numbers<[1], [0], [0], [1], [0, 0, 1, 1], [], []>} : vector<8x128xf32>, vector<128x120xf32>, vector<8x120xf32> -> vector<8x120xf32>
    %111 = arith.addf %106, %110 : vector<8x120xf32>
    %112 = vector.extract_strided_slice %102 {offsets = [16, 0], sizes = [8, 128], strides = [1, 1]} : vector<32x128xf32> to vector<8x128xf32>
    %c2_79 = arith.constant 2 : index
    %c0_80 = arith.constant 0 : index
    %c0_81 = arith.constant 0 : index
    %113 = vector.load %arg6[%c2_79, %c0_80, %c0_81] : memref<4x128x120xf32, #tpu.memory_space<vmem>>, vector<1x128x120xf32>
    %114 = vector.shape_cast %113 : vector<1x128x120xf32> to vector<128x120xf32>
    %cst_82 = arith.constant dense<0.000000e+00> : vector<8x120xf32>
    %115 = tpu.matmul %112, %114, %cst_82 {dimension_numbers = #tpu.dot_dimension_numbers<[1], [0], [0], [1], [0, 0, 1, 1], [], []>} : vector<8x128xf32>, vector<128x120xf32>, vector<8x120xf32> -> vector<8x120xf32>
    %116 = arith.addf %111, %115 : vector<8x120xf32>
    %117 = vector.extract_strided_slice %102 {offsets = [24, 0], sizes = [8, 128], strides = [1, 1]} : vector<32x128xf32> to vector<8x128xf32>
    %c3_83 = arith.constant 3 : index
    %c0_84 = arith.constant 0 : index
    %c0_85 = arith.constant 0 : index
    %118 = vector.load %arg6[%c3_83, %c0_84, %c0_85] : memref<4x128x120xf32, #tpu.memory_space<vmem>>, vector<1x128x120xf32>
    %119 = vector.shape_cast %118 : vector<1x128x120xf32> to vector<128x120xf32>
    %cst_86 = arith.constant dense<0.000000e+00> : vector<8x120xf32>
    %120 = tpu.matmul %117, %119, %cst_86 {dimension_numbers = #tpu.dot_dimension_numbers<[1], [0], [0], [1], [0, 0, 1, 1], [], []>} : vector<8x128xf32>, vector<128x120xf32>, vector<8x120xf32> -> vector<8x120xf32>
    %121 = arith.addf %116, %120 : vector<8x120xf32>
    %c0_87 = arith.constant 0 : index
    %c0_88 = arith.constant 0 : index
    %122 = vector.load %arg7[%c0_87, %c0_88] : memref<1x120xf32, #tpu.memory_space<vmem>>, vector<1x120xf32>
    %123 = vector.broadcast %122 : vector<1x120xf32> to vector<8x120xf32>
    %124 = arith.addf %121, %123 : vector<8x120xf32>
    %cst_89 = arith.constant 0.000000e+00 : f32
    %125 = vector.broadcast %cst_89 : f32 to vector<8x120xf32>
    %126 = arith.maximumf %124, %125 : vector<8x120xf32>
    %c0_90 = arith.constant 0 : index
    %c0_91 = arith.constant 0 : index
    %127 = vector.load %arg8[%c0_90, %c0_91] : memref<120x84xf32, #tpu.memory_space<vmem>>, vector<120x84xf32>
    %cst_92 = arith.constant dense<0.000000e+00> : vector<8x84xf32>
    %128 = tpu.matmul %126, %127, %cst_92 {dimension_numbers = #tpu.dot_dimension_numbers<[1], [0], [0], [1], [0, 0, 1, 1], [], []>} : vector<8x120xf32>, vector<120x84xf32>, vector<8x84xf32> -> vector<8x84xf32>
    %c0_93 = arith.constant 0 : index
    %c0_94 = arith.constant 0 : index
    %129 = vector.load %arg9[%c0_93, %c0_94] : memref<1x84xf32, #tpu.memory_space<vmem>>, vector<1x84xf32>
    %130 = vector.broadcast %129 : vector<1x84xf32> to vector<8x84xf32>
    %131 = arith.addf %128, %130 : vector<8x84xf32>
    %cst_95 = arith.constant 0.000000e+00 : f32
    %132 = vector.broadcast %cst_95 : f32 to vector<8x84xf32>
    %133 = arith.maximumf %131, %132 : vector<8x84xf32>
    %c0_96 = arith.constant 0 : index
    %c0_97 = arith.constant 0 : index
    %134 = vector.load %arg10[%c0_96, %c0_97] : memref<84x10xf32, #tpu.memory_space<vmem>>, vector<84x10xf32>
    %cst_98 = arith.constant dense<0.000000e+00> : vector<8x10xf32>
    %135 = tpu.matmul %133, %134, %cst_98 {dimension_numbers = #tpu.dot_dimension_numbers<[1], [0], [0], [1], [0, 0, 1, 1], [], []>} : vector<8x84xf32>, vector<84x10xf32>, vector<8x10xf32> -> vector<8x10xf32>
    %c0_99 = arith.constant 0 : index
    %c0_100 = arith.constant 0 : index
    %136 = vector.load %arg11[%c0_99, %c0_100] : memref<1x10xf32, #tpu.memory_space<vmem>>, vector<1x10xf32>
    %137 = vector.broadcast %136 : vector<1x10xf32> to vector<8x10xf32>
    %138 = arith.addf %135, %137 : vector<8x10xf32>
    %c0_101 = arith.constant 0 : index
    %c0_102 = arith.constant 0 : index
    %139 = vector.load %arg12[%c0_101, %c0_102] : memref<8x10xf32, #tpu.memory_space<vmem>>, vector<8x10xf32>
    tpu.vector_store %arg12[%c0_101, %c0_102], %138 {strides = array<i32>} : memref<8x10xf32, #tpu.memory_space<vmem>>, vector<8x10xf32>,
    return
  }
  func.func @transform_0(%arg0: i32) -> (i32, i32, i32, i32) {
    %c0_i32 = arith.constant 0 : i32
    %c0_i32_0 = arith.constant 0 : i32
    %c0_i32_1 = arith.constant 0 : i32
    %c0_i32_2 = arith.constant 0 : i32
    return %arg0, %c0_i32, %c0_i32_0, %c0_i32_1 : i32, i32, i32, i32
  }
  func.func @transform_1(%arg0: i32) -> (i32, i32) {
    %c0_i32 = arith.constant 0 : i32
    %c0_i32_0 = arith.constant 0 : i32
    %c0_i32_1 = arith.constant 0 : i32
    return %c0_i32, %c0_i32_0 : i32, i32
  }
  func.func @transform_2(%arg0: i32) -> (i32, i32) {
    %c0_i32 = arith.constant 0 : i32
    %c0_i32_0 = arith.constant 0 : i32
    %c0_i32_1 = arith.constant 0 : i32
    return %c0_i32, %c0_i32_0 : i32, i32
  }
  func.func @transform_3(%arg0: i32) -> (i32, i32, i32) {
    %c0_i32 = arith.constant 0 : i32
    %c0_i32_0 = arith.constant 0 : i32
    %c0_i32_1 = arith.constant 0 : i32
    %c0_i32_2 = arith.constant 0 : i32
    return %c0_i32, %c0_i32_0, %c0_i32_1 : i32, i32, i32
  }
  func.func @transform_4(%arg0: i32) -> (i32, i32) {
    %c0_i32 = arith.constant 0 : i32
    %c0_i32_0 = arith.constant 0 : i32
    %c0_i32_1 = arith.constant 0 : i32
    return %c0_i32, %c0_i32_0 : i32, i32
  }
  func.func @transform_5(%arg0: i32) -> (i32, i32, i32) {
    %c0_i32 = arith.constant 0 : i32
    %c0_i32_0 = arith.constant 0 : i32
    %c0_i32_1 = arith.constant 0 : i32
    %c0_i32_2 = arith.constant 0 : i32
    return %c0_i32, %c0_i32_0, %c0_i32_1 : i32, i32, i32
  }
  func.func @transform_6(%arg0: i32) -> (i32, i32) {
    %c0_i32 = arith.constant 0 : i32
    %c0_i32_0 = arith.constant 0 : i32
    %c0_i32_1 = arith.constant 0 : i32
    return %c0_i32, %c0_i32_0 : i32, i32
  }
  func.func @transform_7(%arg0: i32) -> (i32, i32) {
    %c0_i32 = arith.constant 0 : i32
    %c0_i32_0 = arith.constant 0 : i32
    %c0_i32_1 = arith.constant 0 : i32
    return %c0_i32, %c0_i32_0 : i32, i32
  }
  func.func @transform_8(%arg0: i32) -> (i32, i32) {
    %c0_i32 = arith.constant 0 : i32
    %c0_i32_0 = arith.constant 0 : i32
    %c0_i32_1 = arith.constant 0 : i32
    return %c0_i32, %c0_i32_0 : i32, i32
  }
  func.func @transform_9(%arg0: i32) -> (i32, i32) {
    %c0_i32 = arith.constant 0 : i32
    %c0_i32_0 = arith.constant 0 : i32
    %c0_i32_1 = arith.constant 0 : i32
    return %c0_i32, %c0_i32_0 : i32, i32
  }
  func.func @transform_10(%arg0: i32) -> (i32, i32) {
    %c0_i32 = arith.constant 0 : i32
    %c0_i32_0 = arith.constant 0 : i32
    %c0_i32_1 = arith.constant 0 : i32
    return %c0_i32, %c0_i32_0 : i32, i32
  }
  func.func @transform_11(%arg0: i32) -> (i32, i32) {
    %c0_i32 = arith.constant 0 : i32
    %c0_i32_0 = arith.constant 0 : i32
    return %arg0, %c0_i32 : i32, i32
  }
}

</mosaic_0001>

<bundles_post_ra>
// kernel: lenet5_forward.1
= control target key start
LH: loop header
LB: loop body
LE: loop exit
PB: predicated region body
PF: predicated region fallthrough
CT: control target
= control target key end

     0   :  { %s5725_s0 = inlined_call_operand.vmem [shape: f32[2,4,48,140], index: 0, kind: input, shape index: {}]   ;;  %s5726_s1 = inlined_call_operand.vmem [shape: f32[140,256], index: 1, kind: input, shape index: {}]   ;;  %s5727_s2 = inlined_call_operand.vmem [shape: f32[1,128], index: 2, kind: input, shape index: {}]   ;;  %s5728_s3 = inlined_call_operand.vmem [shape: f32[5,128,256], index: 3, kind: input, shape index: {}]   ;;  %s5729_s4 = inlined_call_operand.vmem [shape: f32[1,128], index: 4, kind: input, shape index: {}]   ;;  %s5730_s5 = inlined_call_operand.vmem [shape: f32[4,128,120], index: 5, kind: input, shape index: {}]   ;;  %s5731_s6 = inlined_call_operand.vmem [shape: f32[1,120], index: 6, kind: input, shape index: {}]   ;;  %s5732_s7 = inlined_call_operand.vmem [shape: f32[120,84], index: 7, kind: input, shape index: {}]   ;;  %s5733_s8 = inlined_call_operand.vmem [shape: f32[1,84], index: 8, kind: input, shape index: {}]   ;;  %s5734_s9 = inlined_call_operand.vmem [shape: f32[84,10], index: 9, kind: input, shape index: {}]   ;;  %s5735_s10 = inlined_call_operand.vmem [shape: f32[1,10], index: 10, kind: input, shape index: {}]   ;;  %s5736_s11 = inlined_call_operand.hbm [shape: f32[16,10], index: 11, kind: output, shape index: {}]  }
   0x1   :  { %5751 = sst [smem:[#allocation16_spill]] %s5725_s0 }
   0x2   :  { %5752 = sst [smem:[#allocation17_spill]] %s5726_s1 }
   0x3   :  { %16 = vsyncpa [#allocation3], 0 }
   0x4   :  { %18 = vsyncpa [#allocation3 + $0x1], 0  ;;  %s3500_s17 = smov 0   ;;  %s3502_s18 = smov 0  }
   0x5   :  { %s3504_s19 = smov 0   ;;  %s3506_s20 = smov 0  }
   0x6 LB: > { %s3521_s21 = sadd.s32 4294967295, %s3435_s20   ;;  %s2777_s22 = sadd.s32 4294967294, %s3435_s20   ;;  %s3435_s20 = sphi %s3506_s20, %s5796_s20   ;;  %s3431_s19 = sphi %s3504_s19, %s5795_s19   ;;  %s3427_s18 = sphi %s3502_s18, %s5794_s18   ;;  %s3423_s17 = sphi %s3500_s17, %s5793_s17  }
   0x7   : > { %s3525_s23 = sadd.s32 1, %s3435_s20   ;;  %s267_s24 = sadd.s32 1, %s3431_s19 }
   0x8   : > { %s264_s25 = ssub.s32 %s3435_s20, %s3525_s23  ;;  %p277_p0 = scmp.ne.s32.totalorder %s3431_s19, %s3427_s18 }
   0x9   : > { %p265_p1 = scmp.eq.s32.totalorder %s264_s25, 0  ;;  %p278_p2 = scmp.eq.s32.totalorder %s3521_s21, 1 }
   0xa   : > { %p283_p3 = scmp.ne.s32.totalorder %s3427_s18, %s3423_s17  ;;  %p284_p4 = scmp.eq.s32.totalorder %s2777_s22, 1 }
   0xb   : > { %s3536_s26 = scalar_select %p265_p1, %s3431_s19, %s267_s24  }
   0xc   : > { %p3538_p5 = por %p278_p2, %p277_p0  ;;  %p3542_p6 = por %p284_p4, %p283_p3 }
   0xd   : > { %p2780_p7 = scmp.ge.s32.totalorder %s3435_s20, 1  ;;  %p340_p8 = scmp.lt.s32.totalorder %s3435_s20, 3 }
   0xf   : > { %p341_p9 = pnand %p2780_p7, %p340_p8 }
  0x11   : > { %344 = sbr.rel (%p341_p9) target bundleno = 1315 (0x523), region = 64 }
  0x16   : > { %s5755_s1 = sld [smem:[#allocation17_spill]]  ;;  %p380_p10 = scmp.lt.s32.totalorder %s3521_s21, 1  ;;  %vm452_vm0 = vcmask 1043456   ;;  %vm433_vm1 = vcmask 97280   ;;  %vm3438_vm2 = vmmov 0   ;;  %vm2532_vm3 = vcmask 982016  }
  0x17   : > { %s5756_s0 = sld [smem:[#allocation16_spill]]  ;;  %vm2625_vm4 = vcmask 687104   ;;  %s377_s22 = sand.u32 1, %s3427_s18   ;;  %vm2702_vm5 = vcmask 80896  }
  0x18   : > { %s381_s29 = scalar_select %p380_p10, %s3521_s21, 1 }
  0x19   : > { %s2781_s24 = sshll.u32 %s377_s22, 3  ;;  %s3036_s14 = sshll.u32 %s3521_s21, 7 }
  0x1a   : > { %s3333_s25 = smul.u32 384, %s381_s29  ;;  %s379_s29 = scalar_lea.vmem [#allocation2], %s2781_s24 }
  0x1b   : > { %s5690_s16 = scalar_lea.hbm %s5736_s11, %s3036_s14  ;;  %s3439_s21 = smov [#allocation2]  }
  0x1c   : > { %v3551_v0 = vld [vmem:[%s5755_s1 + $0xf8] sm:$0xff]  ;;  %v3556_v1 = vld [vmem:[%s5755_s1 + $0xf0] sm:$0xff]  ;;  %v3561_v2 = vld [vmem:[%s5755_s1 + $0xe8] sm:$0xff]  ;;  %s3379_s24 = sshll.u32 %s3439_s21, 4  ;;  %s3380_s24 = int_to_ptr.vmem [resolvable:$false] %s3379_s24 }
  0x1d   : > { %459 = vmatprep.subr.mxu0 %v3551_v0  ;;  %591 = vmatprep.subr.mxu1 %v3551_v0  ;;  %v3568_v3 = vld [vmem:[%s5755_s1 + $0xe0] sm:$0xff]  ;;  %v3575_v4 = vld [vmem:[%s5755_s1 + $0xd8] sm:$0xff]  ;;  %v3582_v5 = vld [vmem:[%s5755_s1 + $0xd0] sm:$0xff]  ;;  %s3778_s12 = scalar_lea.vmem %s5756_s0, %s3333_s25  ;;  %s2718_s25 = sshll.u32 %s379_s29, 4  ;;  %s2719_s25 = int_to_ptr.vmem [resolvable:$true] %s2718_s25 }
  0x1e   : > { %460 = vmatpush1.msra.mxu0 %v3556_v1  ;;  %592 = vmatpush1.msra.mxu1 %v3556_v1  ;;  %v3589_v6 = vld [vmem:[%s5755_s1 + $0xc8] sm:$0xff]  ;;  %v3596_v7 = vld [vmem:[%s5755_s1 + $0xc0] sm:$0xff]  ;;  %v3603_v8 = vld [vmem:[%s5755_s1 + $0xb8] sm:$0xff]  ;;  %s2705_s0 = scalar_lea.sflag [#allocation3], %s377_s22  ;;  %s3381_s30 = scalar_lea.vmem %s3380_s24, 256 }
  0x1f   : > { %461 = vmatprep.subr.mxu0 %v3561_v2  ;;  %593 = vmatprep.subr.mxu1 %v3561_v2  ;;  %v3610_v9 = vld [vmem:[%s5755_s1 + $0xb0] sm:$0xff]  ;;  %v3617_v10 = vld [vmem:[%s5755_s1 + $0xa8] sm:$0xff]  ;;  %v3624_v11 = vld [vmem:[%s5755_s1 + $0xa0] sm:$0xff]  ;;  %p3382_p0 = scmp.lt.s32.totalorder %s2719_s25, %s3380_s24 }
  0x20   : > { %462 = vmatpush1.msra.mxu0 %v3568_v3  ;;  %594 = vmatpush1.msra.mxu1 %v3568_v3  ;;  %v3631_v12 = vld [vmem:[%s5755_s1 + $0x98] sm:$0xff]  ;;  %v3638_v13 = vld [vmem:[%s5755_s1 + $0x90] sm:$0xff]  ;;  %v3645_v14 = vld [vmem:[%s5755_s1 + $0x88] sm:$0xff] }
  0x21   : > { %463 = vmatprep.subr.mxu0 %v3575_v4  ;;  %595 = vmatprep.subr.mxu1 %v3575_v4  ;;  %v3652_v15 = vld [vmem:[%s5755_s1 + $0x80] sm:$0xff]  ;;  %v3659_v16 = vld [vmem:[%s5755_s1 + $0x78] sm:$0xff]  ;;  %v3666_v17 = vld [vmem:[%s5755_s1 + $0x70] sm:$0xff] }
  0x22   : > { %464 = vmatpush1.msra.mxu0 %v3582_v5  ;;  %596 = vmatpush1.msra.mxu1 %v3582_v5  ;;  %v3673_v18 = vld [vmem:[%s5755_s1 + $0x68] sm:$0xff]  ;;  %v3680_v19 = vld [vmem:[%s5755_s1 + $0x60] sm:$0xff]  ;;  %v3687_v20 = vld [vmem:[%s5755_s1 + $0x58] sm:$0xff] }
  0x23   : > { %465 = vmatprep.subr.mxu0 %v3589_v6  ;;  %597 = vmatprep.subr.mxu1 %v3589_v6  ;;  %v3695_v21 = vld [vmem:[%s5755_s1 + $0x50] sm:$0xff]  ;;  %v3702_v22 = vld [vmem:[%s5755_s1 + $0x48] sm:$0xff]  ;;  %v3709_v23 = vld [vmem:[%s5755_s1 + $0x40] sm:$0xff] }
  0x24   : > { %466 = vmatpush1.msra.mxu0 %v3596_v7  ;;  %598 = vmatpush1.msra.mxu1 %v3596_v7  ;;  %v3716_v24 = vld [vmem:[%s5755_s1 + $0x38] sm:$0xff]  ;;  %v3724_v25 = vld [vmem:[%s5755_s1 + $0x30] sm:$0xff]  ;;  %v3731_v26 = vld [vmem:[%s5755_s1 + $0x28] sm:$0xff] }
  0x25   : > { %467 = vmatprep.subr.mxu0 %v3603_v8  ;;  %599 = vmatprep.subr.mxu1 %v3603_v8  ;;  %v3738_v27 = vld [vmem:[%s5755_s1 + $0x20] sm:$0xff]  ;;  %v3745_v28 = vld [vmem:[%s5755_s1 + $0x18] sm:$0xff]  ;;  %v3752_v29 = vld [vmem:[%s5755_s1 + $0x10] sm:$0xff] }
  0x26   : > { %468 = vmatpush1.msra.mxu0 %v3610_v9  ;;  %600 = vmatpush1.msra.mxu1 %v3610_v9  ;;  %v3759_v30 = vld [vmem:[%s5755_s1 + $0x8] sm:$0xff]  ;;  %v3766_v31 = vld [vmem:[%s5755_s1] sm:$0xff]  ;;  %v3773_v32 = vld [vmem:[%s5755_s1 + $0x118] sm:$0xf] }
  0x27   : > { %469 = vmatprep.subr.mxu0 %v3617_v10  ;;  %601 = vmatprep.subr.mxu1 %v3617_v10  ;;  %v3785_v33 = vld [vmem:[%s5755_s1 + $0x110] sm:$0xf]  ;;  %v3792_v34 = vld [vmem:[%s5755_s1 + $0x108] sm:$0xff]  ;;  %v3801_v35 = vld [vmem:[%s5755_s1 + $0x100] sm:$0xff]  ;;  %s3375_s1 = scalar_lea.vmem %s2719_s25, 128 }
  0x28   : > { %470 = vmatpush1.msra.mxu0 %v3624_v11  ;;  %602 = vmatpush1.msra.mxu1 %v3624_v11  ;;  %v386_v36 = vld [vmem:[%s3778_s12 + $0x8] sm:$0xff]  ;;  %v385_v38 = vld [vmem:[%s3778_s12] sm:$0xff]  ;;  %v388_v40 = vld [vmem:[%s3778_s12 + $0x18] sm:$0xff]  ;;  %p3376_p11 = scmp.ne.s32.totalorder %s2719_s25, %s3375_s1  ;;  %p3383_p1 = scmp.lt.s32.totalorder %s3381_s30, %s3375_s1 }
  0x29   : > { %471 = vmatprep.subr.mxu0 %v3631_v12  ;;  %603 = vmatprep.subr.mxu1 %v3631_v12  ;;  %v2792_v37 = vld [vmem:[%s3778_s12 + $0x68] sm:$0xff]  ;;  %v2791_v39 = vld [vmem:[%s3778_s12 + $0x60] sm:$0xff]  ;;  %v2794_v41 = vld [vmem:[%s3778_s12 + $0x78] sm:$0xff] }
  0x2a   : > { %472 = vmatpush1.msra.mxu0 %v3638_v13  ;;  %604 = vmatpush1.msra.mxu1 %v3638_v13  ;;  %v387_v42 = vld [vmem:[%s3778_s12 + $0x10] sm:$0xff]  ;;  %v390_v44 = vld [vmem:[%s3778_s12 + $0x28] sm:$0xff]  ;;  %v389_v46 = vld [vmem:[%s3778_s12 + $0x20] sm:$0xff]  ;;  %p3377_p12 = pnand %p3376_p11, %p3538_p5  ;;  %p3384_p2 = por %p3383_p1, %p3382_p0 }
  0x2b   : > { %473 = vmatprep.subr.mxu0 %v3645_v14  ;;  %605 = vmatprep.subr.mxu1 %v3645_v14  ;;  %v2793_v43 = vld [vmem:[%s3778_s12 + $0x70] sm:$0xff]  ;;  %v2796_v45 = vld [vmem:[%s3778_s12 + $0x88] sm:$0xff]  ;;  %v2795_v47 = vld [vmem:[%s3778_s12 + $0x80] sm:$0xff] }
  0x2c   : > { %474 = vmatpush1.msra.mxu0 %v3652_v15  ;;  %606 = vmatpush1.msra.mxu1 %v3652_v15  ;;  %v392_v48 = vld [vmem:[%s3778_s12 + $0x38] sm:$0xff]  ;;  %v391_v50 = vld [vmem:[%s3778_s12 + $0x30] sm:$0xff]  ;;  %v394_v52 = vld [vmem:[%s3778_s12 + $0x48] sm:$0xff]  ;;  %p3378_p13 = pneg %p3377_p12 }
  0x2d   : > { %475 = vmatprep.subr.mxu0 %v3659_v16  ;;  %607 = vmatprep.subr.mxu1 %v3659_v16  ;;  %v2798_v49 = vld [vmem:[%s3778_s12 + $0x98] sm:$0xff]  ;;  %v2797_v51 = vld [vmem:[%s3778_s12 + $0x90] sm:$0xff]  ;;  %v2800_v53 = vld [vmem:[%s3778_s12 + $0xa8] sm:$0xff] }
  0x2e   : > { %476 = vmatpush1.msra.mxu0 %v3666_v17  ;;  %608 = vmatpush1.msra.mxu1 %v3666_v17  ;;  %v393_v54 = vld [vmem:[%s3778_s12 + $0x40] sm:$0xff]  ;;  %v396_v56 = vld [vmem:[%s3778_s12 + $0x58] sm:$0xff]  ;;  %v395_v58 = vld [vmem:[%s3778_s12 + $0x50] sm:$0xff]  ;;  %p3385_p3 = pnand %p3384_p2, %p3378_p13 }
  0x2f   : > { %477 = vmatprep.subr.mxu0 %v3673_v18  ;;  %609 = vmatprep.subr.mxu1 %v3673_v18  ;;  %v2799_v55 = vld [vmem:[%s3778_s12 + $0xa0] sm:$0xff]  ;;  %v2802_v57 = vld [vmem:[%s3778_s12 + $0xb8] sm:$0xff]  ;;  %v2801_v59 = vld [vmem:[%s3778_s12 + $0xb0] sm:$0xff] }
  0x30   : > { %478 = vmatpush1.msra.mxu0 %v3680_v19  ;;  %610 = vmatpush1.msra.mxu1 %v3680_v19  ;;  %v2812_v60 = vld [vmem:[%s3778_s12 + $0xc8] sm:$0xff]  ;;  %v2811_v62 = vld [vmem:[%s3778_s12 + $0xc0] sm:$0xff] }
  0x31   : > { %479 = vmatprep.subr.mxu0 %v3687_v20  ;;  %611 = vmatprep.subr.mxu1 %v3687_v20  ;;  %v2832_v61 = vld [vmem:[%s3778_s12 + $0x128] sm:$0xff]  ;;  %v2831_v63 = vld [vmem:[%s3778_s12 + $0x120] sm:$0xff] }
  0x32   : > { %480 = vmatpush1.msra.mxu0 %v3695_v21  ;;  %612 = vmatpush1.msra.mxu1 %v3695_v21 }
  0x33   : > { %481 = vmatprep.subr.mxu0 %v3702_v22  ;;  %613 = vmatprep.subr.mxu1 %v3702_v22 }
  0x34   : > { %482 = vmatpush1.msra.mxu0 %v3709_v23  ;;  %614 = vmatpush1.msra.mxu1 %v3709_v23 }
  0x35   : > { %483 = vmatprep.subr.mxu0 %v3716_v24  ;;  %615 = vmatprep.subr.mxu1 %v3716_v24 }
  0x36   : > { %484 = vmatpush1.msra.mxu0 %v3724_v25  ;;  %616 = vmatpush1.msra.mxu1 %v3724_v25 }
  0x37   : > { %485 = vmatprep.subr.mxu0 %v3731_v26  ;;  %617 = vmatprep.subr.mxu1 %v3731_v26 }
  0x38   : > { %486 = vmatpush1.msra.mxu0 %v3738_v27  ;;  %618 = vmatpush1.msra.mxu1 %v3738_v27 }
  0x39   : > { %487 = vmatprep.subr.mxu0 %v3745_v28  ;;  %619 = vmatprep.subr.mxu1 %v3745_v28 }
  0x3a   : > { %488 = vmatpush1.msra.mxu0 %v3752_v29  ;;  %620 = vmatpush1.msra.mxu1 %v3752_v29 }
  0x3b   : > { %489 = vmatprep.subr.mxu0 %v3759_v30  ;;  %621 = vmatprep.subr.mxu1 %v3759_v30 }
  0x3c   : > { %490 = vmatpush1.msra.mxu0 %v3766_v31  ;;  %622 = vmatpush1.msra.mxu1 %v3766_v31 }
  0x3d   : > { %2783 = vmatprep.subr.msk.mxu0 %vm452_vm0, %v3773_v32  ;;  %2803 = vmatprep.subr.msk.mxu1 %vm452_vm0, %v3773_v32 }
  0x3e   : > { %2784 = vmatpush2.msk.msra.mxu0 %vm452_vm0, %v3785_v33  ;;  %2804 = vmatpush2.msk.msra.mxu1 %vm452_vm0, %v3785_v33 }
  0x3f   : > { %521 = vmatprep.subr.mxu0 %v3792_v34  ;;  %653 = vmatprep.subr.mxu1 %v3792_v34 }
  0x40   : > { %522 = vmatpush2.msra.mxu0 %v3801_v35  ;;  %2785 = vmatprep.mubr.msk.f32.mxu0 %vm433_vm1, %v386_v36  ;;  %v4056_v36 = vld [vmem:[%s5728_s3 + $0x78] sm:$0xff] }
  0x41   : > { %654 = vmatpush2.msra.mxu1 %v3801_v35  ;;  %2805 = vmatprep.mubr.msk.f32.mxu1 %vm433_vm1, %v2792_v37  ;;  %v4062_v37 = vld [vmem:[%s5728_s3 + $0x70] sm:$0xff] }
  0x42   : > { %524 = vmatmul.mubr.f32.vlgmr.msra.gmra.mxu0 %v385_v38  ;;  %656 = vmatmul.mubr.f32.vlgmr.msra.gmra.mxu1 %v2791_v39  ;;  %v4068_v38 = vld [vmem:[%s5728_s3 + $0x68] sm:$0xff]  ;;  %v5737_v39 = vmov 0.0  }
  0x43   : > { %723 = vmatprep.subr.mxu0 %v3551_v0  ;;  %855 = vmatprep.subr.mxu1 %v3551_v0  ;;  %v2814_v0 = vld [vmem:[%s3778_s12 + $0xd8] sm:$0xff] }
  0x44   : > { %724 = vmatpush1.msra.mxu0 %v3556_v1  ;;  %856 = vmatpush1.msra.mxu1 %v3556_v1  ;;  %v2834_v1 = vld [vmem:[%s3778_s12 + $0x138] sm:$0xff] }
  0x45   : > { %725 = vmatprep.subr.mxu0 %v3561_v2  ;;  %857 = vmatprep.subr.mxu1 %v3561_v2  ;;  %v3934_v2 = vld [vmem:[%s5728_s3 + $0xf8] sm:$0xff] }
  0x46   : > { %726 = vmatpush1.msra.mxu0 %v3568_v3  ;;  %858 = vmatpush1.msra.mxu1 %v3568_v3  ;;  %v3939_v3 = vld [vmem:[%s5728_s3 + $0xf0] sm:$0xff] }
  0x47   : > { %727 = vmatprep.subr.mxu0 %v3575_v4  ;;  %859 = vmatprep.subr.mxu1 %v3575_v4  ;;  %v2813_v4 = vld [vmem:[%s3778_s12 + $0xd0] sm:$0xff] }
  0x48   : > { %728 = vmatpush1.msra.mxu0 %v3582_v5  ;;  %860 = vmatpush1.msra.mxu1 %v3582_v5  ;;  %v2833_v5 = vld [vmem:[%s3778_s12 + $0x130] sm:$0xff] }
  0x49   : > { %729 = vmatprep.subr.mxu0 %v3589_v6  ;;  %861 = vmatprep.subr.mxu1 %v3589_v6  ;;  %v2816_v6 = vld [vmem:[%s3778_s12 + $0xe8] sm:$0xff] }
  0x4a   : > { %730 = vmatpush1.msra.mxu0 %v3596_v7  ;;  %862 = vmatpush1.msra.mxu1 %v3596_v7  ;;  %v2836_v7 = vld [vmem:[%s3778_s12 + $0x148] sm:$0xff] }
  0x4b   : > { %731 = vmatprep.subr.mxu0 %v3603_v8  ;;  %863 = vmatprep.subr.mxu1 %v3603_v8  ;;  %v3952_v8 = vld [vmem:[%s5728_s3 + $0xe8] sm:$0xff] }
  0x4c   : > { %732 = vmatpush1.msra.mxu0 %v3610_v9  ;;  %864 = vmatpush1.msra.mxu1 %v3610_v9  ;;  %v3957_v9 = vld [vmem:[%s5728_s3 + $0xe0] sm:$0xff] }
  0x4d   : > { %733 = vmatprep.subr.mxu0 %v3617_v10  ;;  %865 = vmatprep.subr.mxu1 %v3617_v10  ;;  %v2815_v10 = vld [vmem:[%s3778_s12 + $0xe0] sm:$0xff] }
  0x4e   : > { %2786 = vmatprep.mubr.msk.f32.mxu0 %vm433_vm1, %v388_v40  ;;  %2806 = vmatprep.mubr.msk.f32.mxu1 %vm433_vm1, %v2794_v41  ;;  %v4075_v40 = vld [vmem:[%s5728_s3 + $0x60] sm:$0xff]  ;;  %v4082_v41 = vld [vmem:[%s5728_s3 + $0x58] sm:$0xff] }
  0x4f   : > { %734 = vmatpush1.msra.mxu0 %v3624_v11  ;;  %866 = vmatpush1.msra.mxu1 %v3624_v11  ;;  %v2835_v11 = vld [vmem:[%s3778_s12 + $0x140] sm:$0xff] }
  0x50   : > { %530 = vmatmul.mubr.f32.gmra.mxu0 %v387_v42  ;;  %662 = vmatmul.mubr.f32.gmra.mxu1 %v2793_v43  ;;  %v4088_v42 = vld [vmem:[%s5728_s3 + $0x50] sm:$0xff]  ;;  %v4094_v43 = vld [vmem:[%s5728_s3 + $0x48] sm:$0xff] }
  0x51   : > { %735 = vmatprep.subr.mxu0 %v3631_v12  ;;  %867 = vmatprep.subr.mxu1 %v3631_v12  ;;  %v2818_v12 = vld [vmem:[%s3778_s12 + $0xf8] sm:$0xff] }
  0x52   : > { %736 = vmatpush1.msra.mxu0 %v3638_v13  ;;  %868 = vmatpush1.msra.mxu1 %v3638_v13  ;;  %v2838_v13 = vld [vmem:[%s3778_s12 + $0x158] sm:$0xff] }
  0x53   : > { %737 = vmatprep.subr.mxu0 %v3645_v14  ;;  %869 = vmatprep.subr.mxu1 %v3645_v14  ;;  %v3970_v14 = vld [vmem:[%s5728_s3 + $0xd8] sm:$0xff] }
  0x54   : > { %2787 = vmatprep.mubr.msk.f32.mxu0 %vm433_vm1, %v390_v44  ;;  %2807 = vmatprep.mubr.msk.f32.mxu1 %vm433_vm1, %v2796_v45  ;;  %v4100_v44 = vld [vmem:[%s5728_s3 + $0x40] sm:$0xff]  ;;  %v4106_v45 = vld [vmem:[%s5728_s3 + $0x38] sm:$0xff] }
  0x55   : > { %738 = vmatpush1.msra.mxu0 %v3652_v15  ;;  %870 = vmatpush1.msra.mxu1 %v3652_v15  ;;  %v3975_v15 = vld [vmem:[%s5728_s3 + $0xd0] sm:$0xff] }
  0x56   : > { %536 = vmatmul.mubr.f32.gmra.mxu0 %v389_v46  ;;  %668 = vmatmul.mubr.f32.gmra.mxu1 %v2795_v47  ;;  %v4112_v46 = vld [vmem:[%s5728_s3 + $0x30] sm:$0xff]  ;;  %v4118_v47 = vld [vmem:[%s5728_s3 + $0x28] sm:$0xff] }
  0x57   : > { %739 = vmatprep.subr.mxu0 %v3659_v16  ;;  %871 = vmatprep.subr.mxu1 %v3659_v16  ;;  %v2817_v16 = vld [vmem:[%s3778_s12 + $0xf0] sm:$0xff] }
  0x58   : > { %740 = vmatpush1.msra.mxu0 %v3666_v17  ;;  %872 = vmatpush1.msra.mxu1 %v3666_v17  ;;  %v2837_v17 = vld [vmem:[%s3778_s12 + $0x150] sm:$0xff] }
  0x59   : > { %741 = vmatprep.subr.mxu0 %v3673_v18  ;;  %873 = vmatprep.subr.mxu1 %v3673_v18  ;;  %v2820_v18 = vld [vmem:[%s3778_s12 + $0x108] sm:$0xff] }
  0x5a   : > { %2788 = vmatprep.mubr.msk.f32.mxu0 %vm433_vm1, %v392_v48  ;;  %2808 = vmatprep.mubr.msk.f32.mxu1 %vm433_vm1, %v2798_v49  ;;  %v4124_v48 = vld [vmem:[%s5728_s3 + $0x20] sm:$0xff]  ;;  %v4129_v49 = vld [vmem:[%s5728_s3 + $0x1f8] sm:$0xff] }
  0x5b   : > { %742 = vmatpush1.msra.mxu0 %v3680_v19  ;;  %874 = vmatpush1.msra.mxu1 %v3680_v19  ;;  %v2840_v19 = vld [vmem:[%s3778_s12 + $0x168] sm:$0xff] }
  0x5c   : > { %542 = vmatmul.mubr.f32.gmra.mxu0 %v391_v50  ;;  %674 = vmatmul.mubr.f32.gmra.mxu1 %v2797_v51  ;;  %v4134_v50 = vld [vmem:[%s5728_s3 + $0x1f0] sm:$0xff]  ;;  %v4140_v51 = vld [vmem:[%s5728_s3 + $0x18] sm:$0xff] }
  0x5d   : > { %743 = vmatprep.subr.mxu0 %v3687_v20  ;;  %875 = vmatprep.subr.mxu1 %v3687_v20  ;;  %v3988_v20 = vld [vmem:[%s5728_s3 + $0xc8] sm:$0xff] }
  0x5e   : > { %744 = vmatpush1.msra.mxu0 %v3695_v21  ;;  %876 = vmatpush1.msra.mxu1 %v3695_v21  ;;  %v3993_v21 = vld [vmem:[%s5728_s3 + $0xc0] sm:$0xff] }
  0x5f   : > { %745 = vmatprep.subr.mxu0 %v3702_v22  ;;  %877 = vmatprep.subr.mxu1 %v3702_v22  ;;  %v2819_v22 = vld [vmem:[%s3778_s12 + $0x100] sm:$0xff] }
  0x60   : > { %746 = vmatpush1.msra.mxu0 %v3709_v23  ;;  %878 = vmatpush1.msra.mxu1 %v3709_v23  ;;  %v2839_v23 = vld [vmem:[%s3778_s12 + $0x160] sm:$0xff] }
  0x61   : > { %747 = vmatprep.subr.mxu0 %v3716_v24  ;;  %879 = vmatprep.subr.mxu1 %v3716_v24  ;;  %v2822_v24 = vld [vmem:[%s3778_s12 + $0x118] sm:$0xff] }
  0x62   : > { %2789 = vmatprep.mubr.msk.f32.mxu0 %vm433_vm1, %v394_v52  ;;  %2809 = vmatprep.mubr.msk.f32.mxu1 %vm433_vm1, %v2800_v53  ;;  %v4146_v52 = vld [vmem:[%s5728_s3 + $0x1e8] sm:$0xff]  ;;  %v4151_v53 = vld [vmem:[%s5728_s3 + $0x1e0] sm:$0xff] }
  0x63   : > { %748 = vmatpush1.msra.mxu0 %v3724_v25  ;;  %880 = vmatpush1.msra.mxu1 %v3724_v25  ;;  %v2842_v25 = vld [vmem:[%s3778_s12 + $0x178] sm:$0xff] }
  0x64   : > { %548 = vmatmul.mubr.f32.gmra.mxu0 %v393_v54  ;;  %680 = vmatmul.mubr.f32.gmra.mxu1 %v2799_v55  ;;  %v4157_v54 = vld [vmem:[%s5728_s3 + $0x10] sm:$0xff]  ;;  %v4164_v55 = vld [vmem:[%s5728_s3 + $0x8] sm:$0xff] }
  0x65   : > { %749 = vmatprep.subr.mxu0 %v3731_v26  ;;  %881 = vmatprep.subr.mxu1 %v3731_v26  ;;  %v4006_v26 = vld [vmem:[%s5728_s3 + $0xb8] sm:$0xff] }
  0x66   : > { %750 = vmatpush1.msra.mxu0 %v3738_v27  ;;  %882 = vmatpush1.msra.mxu1 %v3738_v27  ;;  %v4011_v27 = vld [vmem:[%s5728_s3 + $0xb0] sm:$0xff] }
  0x67   : > { %751 = vmatprep.subr.mxu0 %v3745_v28  ;;  %883 = vmatprep.subr.mxu1 %v3745_v28  ;;  %v2821_v28 = vld [vmem:[%s3778_s12 + $0x110] sm:$0xff] }
  0x68   : > { %2790 = vmatprep.mubr.msk.f32.mxu0 %vm433_vm1, %v396_v56  ;;  %2810 = vmatprep.mubr.msk.f32.mxu1 %vm433_vm1, %v2802_v57  ;;  %v4171_v56 = vld [vmem:[%s5728_s3] sm:$0xff]  ;;  %v4181_v57 = vld [vmem:[%s5728_s3 + $0x1d8] sm:$0xff] }
  0x69   : > { %752 = vmatpush1.msra.mxu0 %v3752_v29  ;;  %884 = vmatpush1.msra.mxu1 %v3752_v29  ;;  %v2841_v29 = vld [vmem:[%s3778_s12 + $0x170] sm:$0xff] }
  0x6a   : > { %554 = vmatmul.mubr.f32.gmra.mxu0 %v395_v58  ;;  %686 = vmatmul.mubr.f32.gmra.mxu1 %v2801_v59  ;;  %v4186_v58 = vld [vmem:[%s5728_s3 + $0x1d0] sm:$0xff]  ;;  %v4191_v59 = vld [vmem:[%s5728_s3 + $0x1c8] sm:$0xff] }
  0x6b   : > { %753 = vmatprep.subr.mxu0 %v3759_v30  ;;  %885 = vmatprep.subr.mxu1 %v3759_v30  ;;  %v4021_v30 = vld [vmem:[%s5728_s3 + $0xa8] sm:$0xff] }
  0x6c   : > { %754 = vmatpush1.msra.mxu0 %v3766_v31  ;;  %886 = vmatpush1.msra.mxu1 %v3766_v31  ;;  %v4027_v31 = vld [vmem:[%s5728_s3 + $0xa0] sm:$0xff] }
  0x6d   : > { %2823 = vmatprep.subr.msk.mxu0 %vm452_vm0, %v3773_v32  ;;  %2843 = vmatprep.subr.msk.mxu1 %vm452_vm0, %v3773_v32  ;;  %v4032_v32 = vld [vmem:[%s5728_s3 + $0x98] sm:$0xff] }
  0x6e   : > { %2824 = vmatpush2.msk.msra.mxu0 %vm452_vm0, %v3785_v33  ;;  %2844 = vmatpush2.msk.msra.mxu1 %vm452_vm0, %v3785_v33  ;;  %v4038_v33 = vld [vmem:[%s5728_s3 + $0x90] sm:$0xff] }
  0x6f   : > { %785 = vmatprep.subr.mxu0 %v3792_v34  ;;  %917 = vmatprep.subr.mxu1 %v3792_v34  ;;  %v4044_v34 = vld [vmem:[%s5728_s3 + $0x88] sm:$0xff] }
  0x70   : > { %786 = vmatpush2.msra.mxu0 %v3801_v35  ;;  %2825 = vmatprep.mubr.msk.f32.mxu0 %vm433_vm1, %v2812_v60  ;;  %v4197_v60 = vld [vmem:[%s5728_s3 + $0x1c0] sm:$0xff] }
  0x71   : > { %918 = vmatpush2.msra.mxu1 %v3801_v35  ;;  %2845 = vmatprep.mubr.msk.f32.mxu1 %vm433_vm1, %v2832_v61  ;;  %v4050_v35 = vld [vmem:[%s5728_s3 + $0x80] sm:$0xff]  ;;  %v4205_v61 = vld [vmem:[%s5728_s3 + $0x1b8] sm:$0xff] }
  0x72   : > { %788 = vmatmul.mubr.f32.vlgmr.msra.gmra.mxu0 %v2811_v62  ;;  %920 = vmatmul.mubr.f32.vlgmr.msra.gmra.mxu1 %v2831_v63  ;;  %v4211_v62 = vld [vmem:[%s5728_s3 + $0x1b0] sm:$0xff]  ;;  %v4217_v63 = vld [vmem:[%s5728_s3 + $0x1a8] sm:$0xff] }
  0x73   : > { %2826 = vmatprep.mubr.msk.f32.mxu0 %vm433_vm1, %v2814_v0  ;;  %2846 = vmatprep.mubr.msk.f32.mxu1 %vm433_vm1, %v2834_v1  ;;  %v4222_v0 = vld [vmem:[%s5728_s3 + $0x1a0] sm:$0xff]  ;;  %v4227_v1 = vld [vmem:[%s5728_s3 + $0x198] sm:$0xff] }
  0x74   : > { %1177 = vmatprep.subr.mxu1 %v3934_v2  ;;  %1088 = vmatprep.subr.mxu0 %v4129_v49 }
  0x75   : > { %1178 = vmatpush1.msra.mxu1 %v3939_v3  ;;  %1089 = vmatpush1.msra.mxu0 %v4134_v50 }
  0x76   : > { %794 = vmatmul.mubr.f32.gmra.mxu0 %v2813_v4  ;;  %926 = vmatmul.mubr.f32.gmra.mxu1 %v2833_v5  ;;  %v4241_v4 = vld [vmem:[%s5728_s3 + $0x188] sm:$0xff]  ;;  %v4247_v5 = vld [vmem:[%s5728_s3 + $0x180] sm:$0xff] }
  0x77   : > { %2827 = vmatprep.mubr.msk.f32.mxu0 %vm433_vm1, %v2816_v6  ;;  %2847 = vmatprep.mubr.msk.f32.mxu1 %vm433_vm1, %v2836_v7  ;;  %v4253_v6 = vld [vmem:[%s5728_s3 + $0x178] sm:$0xff]  ;;  %v4259_v7 = vld [vmem:[%s5728_s3 + $0x170] sm:$0xff] }
  0x78   : > { %1179 = vmatprep.subr.mxu1 %v3952_v8  ;;  %1090 = vmatprep.subr.mxu0 %v4146_v52 }
  0x79   : > { %1180 = vmatpush1.msra.mxu1 %v3957_v9  ;;  %1091 = vmatpush1.msra.mxu0 %v4151_v53 }
  0x7a   : > { %800 = vmatmul.mubr.f32.gmra.mxu0 %v2815_v10  ;;  %932 = vmatmul.mubr.f32.gmra.mxu1 %v2835_v11  ;;  %v4265_v10 = vld [vmem:[%s5728_s3 + $0x168] sm:$0xff]  ;;  %v4271_v11 = vld [vmem:[%s5728_s3 + $0x160] sm:$0xff] }
  0x7b   : > { %2828 = vmatprep.mubr.msk.f32.mxu0 %vm433_vm1, %v2818_v12  ;;  %2848 = vmatprep.mubr.msk.f32.mxu1 %vm433_vm1, %v2838_v13  ;;  %v4277_v12 = vld [vmem:[%s5728_s3 + $0x158] sm:$0xff]  ;;  %v4282_v13 = vld [vmem:[%s5728_s3 + $0x150] sm:$0xff] }
  0x7c   : > { %1181 = vmatprep.subr.mxu1 %v3970_v14  ;;  %1092 = vmatprep.subr.mxu0 %v4181_v57  ;;  %5757 = vst [vmem:[#allocation5_spill] sm:$0xff] %v4282_v13 }
  0x7d   : > { %1182 = vmatpush1.msra.mxu1 %v3975_v15  ;;  %1093 = vmatpush1.msra.mxu0 %v4186_v58 }
  0x7e   : > { %806 = vmatmul.mubr.f32.gmra.mxu0 %v2817_v16  ;;  %938 = vmatmul.mubr.f32.gmra.mxu1 %v2837_v17  ;;  %v4289_v16 = vld [vmem:[%s5728_s3 + $0x148] sm:$0xff]  ;;  %v4295_v17 = vld [vmem:[%s5728_s3 + $0x140] sm:$0xff] }
  0x7f   : > { %2829 = vmatprep.mubr.msk.f32.mxu0 %vm433_vm1, %v2820_v18  ;;  %2849 = vmatprep.mubr.msk.f32.mxu1 %vm433_vm1, %v2840_v19  ;;  %5758 = vst [vmem:[#allocation6_spill] sm:$0xff] %v4289_v16  ;;  %5759 = vst [vmem:[#allocation7_spill] sm:$0xff] %v4295_v17  ;;  %v4301_v18 = vld [vmem:[%s5728_s3 + $0x138] sm:$0xff]  ;;  %v4307_v19 = vld [vmem:[%s5728_s3 + $0x130] sm:$0xff] }
  0x80   : > { %1183 = vmatprep.subr.mxu1 %v3988_v20  ;;  %1094 = vmatprep.subr.mxu0 %v4191_v59  ;;  %5760 = vst [vmem:[#allocation8_spill] sm:$0xff] %v4301_v18  ;;  %5761 = vst [vmem:[#allocation9_spill] sm:$0xff] %v4307_v19 }
  0x81   : > { %1184 = vmatpush1.msra.mxu1 %v3993_v21  ;;  %1095 = vmatpush1.msra.mxu0 %v4197_v60 }
  0x82   : > { %812 = vmatmul.mubr.f32.gmra.mxu0 %v2819_v22  ;;  %944 = vmatmul.mubr.f32.gmra.mxu1 %v2839_v23  ;;  %v4313_v22 = vld [vmem:[%s5728_s3 + $0x128] sm:$0xff]  ;;  %v4319_v23 = vld [vmem:[%s5728_s3 + $0x120] sm:$0xff] }
  0x83   : > { %2830 = vmatprep.mubr.msk.f32.mxu0 %vm433_vm1, %v2822_v24  ;;  %2850 = vmatprep.mubr.msk.f32.mxu1 %vm433_vm1, %v2842_v25  ;;  %5762 = vst [vmem:[#allocation10_spill] sm:$0xff] %v4313_v22  ;;  %5763 = vst [vmem:[#allocation11_spill] sm:$0xff] %v4319_v23  ;;  %v4325_v24 = vld [vmem:[%s5728_s3 + $0x118] sm:$0xff]  ;;  %v4331_v25 = vld [vmem:[%s5728_s3 + $0x110] sm:$0xff] }
  0x84   : > { %1185 = vmatprep.subr.mxu1 %v4006_v26  ;;  %1096 = vmatprep.subr.mxu0 %v4205_v61  ;;  %5764 = vst [vmem:[#allocation12_spill] sm:$0xff] %v4325_v24  ;;  %5765 = vst [vmem:[#allocation13_spill] sm:$0xff] %v4331_v25 }
  0x85   : > { %1186 = vmatpush1.msra.mxu1 %v4011_v27  ;;  %1097 = vmatpush1.msra.mxu0 %v4211_v62 }
  0x86   : > { %818 = vmatmul.mubr.f32.gmra.mxu0 %v2821_v28  ;;  %950 = vmatmul.mubr.f32.gmra.mxu1 %v2841_v29  ;;  %v4337_v28 = vld [vmem:[%s5728_s3 + $0x108] sm:$0xff]  ;;  %v4343_v29 = vld [vmem:[%s5728_s3 + $0x100] sm:$0xff] }
  0x87   : > { %1187 = vmatprep.subr.mxu1 %v4021_v30  ;;  %1241 = vmatprep.mubr.f32.mxu1 %v5737_v39  ;;  %5766 = vst [vmem:[#allocation14_spill] sm:$0xff] %v4337_v28  ;;  %5767 = vst [vmem:[#allocation15_spill] sm:$0xff] %v4343_v29 }
  0x88   : > { %1188 = vmatpush1.msra.mxu1 %v4027_v31  ;;  %1152 = vmatprep.mubr.f32.mxu0 %v5737_v39 }
  0x89   : > { %1189 = vmatprep.subr.mxu1 %v4032_v32  ;;  %1098 = vmatprep.subr.mxu0 %v4217_v63 }
  0x8a   : > { %1190 = vmatpush1.msra.mxu1 %v4038_v33  ;;  %1099 = vmatpush1.msra.mxu0 %v4222_v0 }
  0x8b   : > { %1191 = vmatprep.subr.mxu1 %v4044_v34  ;;  %1100 = vmatprep.subr.mxu0 %v4227_v1 }
  0x8c   : > { %1192 = vmatpush1.msra.mxu1 %v4050_v35 }
  0x8d   : > { %1193 = vmatprep.subr.mxu1 %v4056_v36 }
  0x8e   : > { %1194 = vmatpush1.msra.mxu1 %v4062_v37 }
  0x8f   : > { %1195 = vmatprep.subr.mxu1 %v4068_v38 }
  0x90   : > { %1196 = vmatpush1.msra.mxu1 %v4075_v40 }
  0x91   : > { %1197 = vmatprep.subr.mxu1 %v4082_v41 }
  0x92   : > { %1198 = vmatpush1.msra.mxu1 %v4088_v42 }
  0x93   : > { %1199 = vmatprep.subr.mxu1 %v4094_v43 }
  0x94   : > { %1200 = vmatpush1.msra.mxu1 %v4100_v44 }
  0x95   : > { %1201 = vmatprep.subr.mxu1 %v4106_v45 }
  0x96   : > { %1202 = vmatpush1.msra.mxu1 %v4112_v46 }
  0x97   : > { %1203 = vmatprep.subr.mxu1 %v4118_v47 }
  0x98   : > { %1204 = vmatpush1.msra.mxu1 %v4124_v48 }
  0x99   : > { %1205 = vmatprep.subr.mxu1 %v4140_v51 }
  0x9a   : > { %1206 = vmatpush1.msra.mxu1 %v4157_v54 }
  0x9b   : > { %1207 = vmatprep.subr.mxu1 %v4164_v55 }
  0x9c   : > { %1208 = vmatpush1.msra.mxu1 %v4171_v56 }
  0x9d   : > { %1355 = vmatprep.subr.mxu1 %v3934_v2  ;;  %v4233_v2 = vld [vmem:[%s5728_s3 + $0x190] sm:$0xff] }
  0x9e   : > { %1101 = vmatpush1.msra.mxu0 %v4233_v2 }
  0x9f   : > { %1102 = vmatprep.subr.mxu0 %v4241_v4 }
  0xa0   : > { %1103 = vmatpush1.msra.mxu0 %v4247_v5 }
  0xa1   : > { %1104 = vmatprep.subr.mxu0 %v4253_v6 }
  0xa2   : > { %1105 = vmatpush1.msra.mxu0 %v4259_v7 }
  0xa3   : > { %1106 = vmatprep.subr.mxu0 %v4265_v10 }
  0xa4   : > { %1107 = vmatpush1.msra.mxu0 %v4271_v11 }
  0xa5   : > { %1108 = vmatprep.subr.mxu0 %v4277_v12 }
  0xa6   : > { %1109 = vmatpush1.msra.mxu0 %v4282_v13 }
  0xa7   : > { %1110 = vmatprep.subr.mxu0 %v4289_v16 }
  0xa8   : > { %1111 = vmatpush1.msra.mxu0 %v4295_v17 }
  0xa9   : > { %1112 = vmatprep.subr.mxu0 %v4301_v18  ;;  %v4350_v18 = vld [vmem:[%s5727_s2] ss:$0 sm:$0xff] }
  0xaa   : > { %1113 = vmatpush1.msra.mxu0 %v4307_v19 }
  0xab   : > { %1114 = vmatprep.subr.mxu0 %v4313_v22 }
  0xac   : > { %1115 = vmatpush1.msra.mxu0 %v4319_v23 }
  0xad   : > { %1116 = vmatprep.subr.mxu0 %v4325_v24 }
  0xae   : > { %1117 = vmatpush1.msra.mxu0 %v4331_v25 }
  0xaf   : > { %1118 = vmatprep.subr.mxu0 %v4337_v28 }
  0xb0   : > { %1119 = vmatpush1.msra.mxu0 %v4343_v29  ;;  %v5768_v29 = vmov 0.0  }
  0xb1   : > { %1266 = vmatprep.subr.mxu0 %v4129_v49 }
 0x102   : > { %v525_v39 = vpop.f32.mrf.mxu0  ;;  %v657_v24 = vpop.f32.mrf.mxu1 }
 0x104   : > { %v527_v23 = vpop.f32.mrf.mxu0  ;;  %v659_v25 = vpop.f32.mrf.mxu1 }
 0x105   : > { %v957_v22 = vmax.f32 %v525_v39, %v527_v23  ;;  %v963_v19 = vmax.f32 %v657_v24, %v659_v25 }
 0x107   : > { %v969_v28 = vmax.f32 %v957_v22, %v963_v19 }
 0x109   : > { %v981_v17 = vadd.f32 %v4350_v18, %v969_v28 }
 0x10b   : > { %v987_v16 = vmax.f32 %v981_v17, 0.0 }
 0x10d   : > { %1242 = vmatmul.mubr.f32.vlgmr.msra.gmra.mxu1 %v987_v16 }
 0x10e   : > { %1356 = vmatpush1.msra.mxu1 %v3939_v3  ;;  %1247 = vmatprep.mubr.f32.mxu1 %v5768_v29 }
 0x10f   : > { %1357 = vmatprep.subr.mxu1 %v3952_v8 }
 0x110   : > { %v531_v49 = vpop.f32.mrf.mxu0  ;;  %v663_v13 = vpop.f32.mrf.mxu1  ;;  %1358 = vmatpush1.msra.mxu1 %v3957_v9 }
 0x111   : > { %1359 = vmatprep.subr.mxu1 %v3970_v14 }
 0x112   : > { %v533_v39 = vpop.f32.mrf.mxu0  ;;  %v665_v23 = vpop.f32.mrf.mxu1  ;;  %1360 = vmatpush1.msra.mxu1 %v3975_v15 }
 0x113   : > { %v958_v19 = vmax.f32 %v531_v49, %v533_v39  ;;  %v964_v22 = vmax.f32 %v663_v13, %v665_v23  ;;  %1361 = vmatprep.subr.mxu1 %v3988_v20 }
 0x114   : > { %1362 = vmatpush1.msra.mxu1 %v3993_v21 }
 0x115   : > { %v970_v3 = vmax.f32 %v958_v19, %v964_v22  ;;  %1363 = vmatprep.subr.mxu1 %v4006_v26 }
 0x116   : > { %v537_v8 = vpop.f32.mrf.mxu0  ;;  %v669_v16 = vpop.f32.mrf.mxu1  ;;  %1364 = vmatpush1.msra.mxu1 %v4011_v27 }
 0x117   : > { %v982_v9 = vadd.f32 %v4350_v18, %v970_v3  ;;  %1365 = vmatprep.subr.mxu1 %v4021_v30 }
 0x118   : > { %v539_v14 = vpop.f32.mrf.mxu0  ;;  %v671_v17 = vpop.f32.mrf.mxu1  ;;  %1366 = vmatpush1.msra.mxu1 %v4027_v31 }
 0x119   : > { %v959_v15 = vmax.f32 %v537_v8, %v539_v14  ;;  %v965_v13 = vmax.f32 %v669_v16, %v671_v17  ;;  %v4366_v20 = vmax.f32 %v982_v9, 0.0  ;;  %1367 = vmatprep.subr.mxu1 %v4032_v32 }
 0x11a   : > { %1368 = vmatpush1.msra.mxu1 %v4038_v33 }
 0x11b   : > { %v971_v21 = vmax.f32 %v959_v15, %v965_v13  ;;  %1248 = vmatmul.mubr.f32.gmra.mxu1 %v4366_v20  ;;  %1369 = vmatprep.subr.mxu1 %v4044_v34 }
 0x11c   : > { %v543_v26 = vpop.f32.mrf.mxu0  ;;  %v675_v27 = vpop.f32.mrf.mxu1  ;;  %1253 = vmatprep.mubr.f32.mxu1 %v5768_v29  ;;  %1370 = vmatpush1.msra.mxu1 %v4050_v35 }
 0x11d   : > { %v983_v30 = vadd.f32 %v4350_v18, %v971_v21  ;;  %1371 = vmatprep.subr.mxu1 %v4056_v36 }
 0x11e   : > { %v545_v31 = vpop.f32.mrf.mxu0  ;;  %v677_v24 = vpop.f32.mrf.mxu1  ;;  %1372 = vmatpush1.msra.mxu1 %v4062_v37 }
 0x11f   : > { %v4377_v32 = vmax.f32 %v983_v30, 0.0  ;;  %v960_v33 = vmax.f32 %v543_v26, %v545_v31  ;;  %v966_v25 = vmax.f32 %v675_v27, %v677_v24  ;;  %1373 = vmatprep.subr.mxu1 %v4068_v38  ;;  %v4414_v31 = vld [vmem:[%s5728_s3 + $0x2f0] sm:$0xff] }
 0x120   : > { %1374 = vmatpush1.msra.mxu1 %v4075_v40 }
 0x121   : > { %v972_v34 = vmax.f32 %v960_v33, %v966_v25  ;;  %1254 = vmatmul.mubr.f32.gmra.mxu1 %v4377_v32  ;;  %1375 = vmatprep.subr.mxu1 %v4082_v41  ;;  %v4419_v25 = vld [vmem:[%s5728_s3 + $0x2e8] sm:$0xff] }
 0x122   : > { %1259 = vmatprep.mubr.f32.mxu1 %v5768_v29  ;;  %1376 = vmatpush1.msra.mxu1 %v4088_v42 }
 0x123   : > { %v984_v35 = vadd.f32 %v4350_v18, %v972_v34  ;;  %1377 = vmatprep.subr.mxu1 %v4094_v43 }
 0x124   : > { %v549_v36 = vpop.f32.mrf.mxu0  ;;  %v681_v37 = vpop.f32.mrf.mxu1  ;;  %1378 = vmatpush1.msra.mxu1 %v4100_v44 }
 0x125   : > { %v4388_v38 = vmax.f32 %v984_v35, 0.0  ;;  %1379 = vmatprep.subr.mxu1 %v4106_v45  ;;  %v4403_v45 = vld [vmem:[%s5728_s3 + $0x2f8] sm:$0xff] }
 0x126   : > { %v551_v40 = vpop.f32.mrf.mxu0  ;;  %v683_v28 = vpop.f32.mrf.mxu1  ;;  %1380 = vmatpush1.msra.mxu1 %v4112_v46 }
 0x127   : > { %v961_v41 = vmax.f32 %v549_v36, %v551_v40  ;;  %v967_v49 = vmax.f32 %v681_v37, %v683_v28  ;;  %1260 = vmatmul.mubr.f32.gmra.mxu1 %v4388_v38  ;;  %1381 = vmatprep.subr.mxu1 %v4118_v47  ;;  %v4425_v37 = vld [vmem:[%s5728_s3 + $0x2e0] sm:$0xff] }
 0x128   : > { %1382 = vmatpush1.msra.mxu1 %v4124_v48  ;;  %1419 = vmatprep.mubr.f32.mxu1 %v5768_v29 }
 0x129   : > { %v4396_v42 = vmax.f32 %v961_v41, %v967_v49  ;;  %1383 = vmatprep.subr.mxu1 %v4140_v51 }
 0x12a   : > { %v555_v43 = vpop.f32.mrf.mxu0  ;;  %v687_v44 = vpop.f32.mrf.mxu1  ;;  %1384 = vmatpush1.msra.mxu1 %v4157_v54 }
 0x12b   : > { %1385 = vmatprep.subr.mxu1 %v4164_v55 }
 0x12c   : > { %v557_v46 = vpop.f32.mrf.mxu0  ;;  %v689_v47 = vpop.f32.mrf.mxu1  ;;  %1386 = vmatpush1.msra.mxu1 %v4171_v56 }
 0x12d   : > { %v962_v48 = vmax.f32 %v555_v43, %v557_v46  ;;  %v968_v39 = vmax.f32 %v687_v44, %v689_v47  ;;  %1574 = vmatprep.subr.mxu1 %v4403_v45  ;;  %v4436_v43 = vld [vmem:[%s5728_s3 + $0x2d8] sm:$0xff]  ;;  %v4443_v46 = vld [vmem:[%s5728_s3 + $0x2d0] sm:$0xff] }
 0x12f   : > { %v4408_v51 = vmax.f32 %v962_v48, %v968_v39  ;;  %v4458_v39 = vld [vmem:[%s5728_s3 + $0x2c0] sm:$0xff] }
 0x132   : > { %v789_v23 = vpop.f32.mrf.mxu0  ;;  %v921_v19 = vpop.f32.mrf.mxu1 }
 0x134   : > { %v791_v54 = vpop.f32.mrf.mxu0  ;;  %v923_v22 = vpop.f32.mrf.mxu1 }
 0x135   : > { %v993_v3 = vmax.f32 %v789_v23, %v791_v54  ;;  %v999_v8 = vmax.f32 %v921_v19, %v923_v22 }
 0x136   : > { %v795_v16 = vpop.f32.mrf.mxu0  ;;  %v927_v9 = vpop.f32.mrf.mxu1 }
 0x137   : > { %v1005_v14 = vmax.f32 %v993_v3, %v999_v8  ;;  %v4509_v3 = vld [vmem:[%s5728_s3 + $0x290] sm:$0xff]  ;;  %v5771_v8 = vld [vmem:[#allocation7_spill] sm:$0xff] }
 0x138   : > { %v797_v55 = vpop.f32.mrf.mxu0  ;;  %v929_v17 = vpop.f32.mrf.mxu1 }
 0x139   : > { %v1011_v15 = vadd.f32 %v4350_v18, %v1005_v14  ;;  %v994_v56 = vmax.f32 %v795_v16, %v797_v55  ;;  %v1000_v13 = vmax.f32 %v927_v9, %v929_v17  ;;  %v4592_v16 = vld [vmem:[%s5728_s3 + $0x238] sm:$0xff]  ;;  %v5772_v9 = vld [vmem:[#allocation8_spill] sm:$0xff]  ;;  %v4601_v14 = vld [vmem:[%s5728_s3 + $0x230] sm:$0xff] }
 0x13a   : > { %v801_v21 = vpop.f32.mrf.mxu0  ;;  %v933_v26 = vpop.f32.mrf.mxu1  ;;  %v5773_v55 = vld [vmem:[#allocation9_spill] sm:$0xff]  ;;  %v4608_v17 = vld [vmem:[%s5728_s3 + $0x228] sm:$0xff] }
 0x13b   : > { %v1017_v27 = vmax.f32 %v1011_v15, 0.0  ;;  %v1006_v30 = vmax.f32 %v994_v56, %v1000_v13  ;;  %v5774_v15 = vld [vmem:[#allocation10_spill] sm:$0xff]  ;;  %v4615_v56 = vld [vmem:[%s5728_s3 + $0x220] sm:$0xff] }
 0x13c   : > { %v803_v24 = vpop.f32.mrf.mxu0  ;;  %v935_v33 = vpop.f32.mrf.mxu1  ;;  %v5775_v13 = vld [vmem:[#allocation11_spill] sm:$0xff] }
 0x13d   : > { %v1012_v34 = vadd.f32 %v4350_v18, %v1006_v30  ;;  %v995_v35 = vmax.f32 %v801_v21, %v803_v24  ;;  %v1001_v36 = vmax.f32 %v933_v26, %v935_v33  ;;  %1153 = vmatmul.mubr.f32.vlgmr.msra.gmra.mxu0 %v1017_v27  ;;  %1420 = vmatmul.mubr.f32.vlgmr.msra.gmra.mxu1 %v1017_v27  ;;  %v4622_v21 = vld [vmem:[%s5728_s3 + $0x218] sm:$0xff]  ;;  %v5776_v26 = vld [vmem:[#allocation12_spill] sm:$0xff]  ;;  %v4629_v27 = vld [vmem:[%s5728_s3 + $0x210] sm:$0xff] }
 0x13e   : > { %1267 = vmatpush1.msra.mxu0 %v4134_v50  ;;  %1575 = vmatpush1.msra.mxu1 %v4414_v31  ;;  %v807_v40 = vpop.f32.mrf.mxu0  ;;  %v939_v28 = vpop.f32.mrf.mxu1  ;;  %v5777_v30 = vld [vmem:[#allocation13_spill] sm:$0xff]  ;;  %v4636_v24 = vld [vmem:[%s5728_s3 + $0x208] sm:$0xff]  ;;  %v5778_v33 = vld [vmem:[#allocation14_spill] sm:$0xff] }
 0x13f   : > { %v4429_v41 = vmax.f32 %v1012_v34, 0.0  ;;  %v1007_v49 = vmax.f32 %v995_v35, %v1001_v36  ;;  %1268 = vmatprep.subr.mxu0 %v4146_v52  ;;  %1576 = vmatprep.subr.mxu1 %v4419_v25  ;;  %v4643_v34 = vld [vmem:[%s5728_s3 + $0x200] sm:$0xff]  ;;  %v4652_v36 = vld [vmem:[%s5728_s3 + $0x3f8] sm:$0xff] }
 0x140   : > { %1269 = vmatpush1.msra.mxu0 %v4151_v53  ;;  %1577 = vmatpush1.msra.mxu1 %v4425_v37  ;;  %v809_v50 = vpop.f32.mrf.mxu0  ;;  %v941_v44 = vpop.f32.mrf.mxu1  ;;  %v4451_v53 = vld [vmem:[%s5728_s3 + $0x2c8] sm:$0xff]  ;;  %v5779_v35 = vld [vmem:[#allocation15_spill] sm:$0xff] }
 0x141   : > { %v1013_v52 = vadd.f32 %v4350_v18, %v1007_v49  ;;  %v996_v47 = vmax.f32 %v807_v40, %v809_v50  ;;  %v1002_v48 = vmax.f32 %v939_v28, %v941_v44  ;;  %1158 = vmatprep.mubr.f32.mxu0 %v5768_v29  ;;  %1270 = vmatprep.subr.mxu0 %v4181_v57  ;;  %v4469_v57 = vld [vmem:[%s5728_s3 + $0x2b8] sm:$0xff]  ;;  %v4659_v49 = vld [vmem:[%s5728_s3 + $0x3f0] sm:$0xff]  ;;  %v4666_v50 = vld [vmem:[%s5728_s3 + $0x3e8] sm:$0xff] }
 0x142   : > { %1578 = vmatprep.subr.mxu1 %v4436_v43  ;;  %1159 = vmatmul.mubr.f32.gmra.mxu0 %v4429_v41  ;;  %v813_v40 = vpop.f32.mrf.mxu0  ;;  %v945_v28 = vpop.f32.mrf.mxu1  ;;  %v4675_v44 = vld [vmem:[%s5728_s3 + $0x3e0] sm:$0xff] }
 0x143   : > { %v4460_v23 = vmax.f32 %v1013_v52, 0.0  ;;  %v1008_v19 = vmax.f32 %v996_v47, %v1002_v48  ;;  %1271 = vmatpush1.msra.mxu0 %v4186_v58  ;;  %1579 = vmatpush1.msra.mxu1 %v4443_v46  ;;  %v4477_v58 = vld [vmem:[%s5728_s3 + $0x2b0] sm:$0xff] }
 0x144   : > { %1272 = vmatprep.subr.mxu0 %v4191_v59  ;;  %1580 = vmatprep.subr.mxu1 %v4451_v53  ;;  %v4484_v59 = vld [vmem:[%s5728_s3 + $0x2a8] sm:$0xff]  ;;  %v815_v52 = vpop.f32.mrf.mxu0 }
 0x145   : > { %v1014_v54 = vadd.f32 %v4350_v18, %v1008_v19  ;;  %1273 = vmatpush1.msra.mxu0 %v4197_v60  ;;  %1581 = vmatpush1.msra.mxu1 %v4458_v39  ;;  %v4491_v60 = vld [vmem:[%s5728_s3 + $0x2a0] sm:$0xff]  ;;  %v997_v47 = vmax.f32 %v813_v40, %v815_v52  ;;  %v5007_v40 = vld [vmem:[%s5728_s3 + $0x490] sm:$0xff]  ;;  %v5043_v52 = vld [vmem:[%s5728_s3 + $0x468] sm:$0xff] }
 0x146   : > { %1164 = vmatprep.mubr.f32.mxu0 %v5768_v29  ;;  %1274 = vmatprep.subr.mxu0 %v4205_v61  ;;  %v4502_v61 = vld [vmem:[%s5728_s3 + $0x298] sm:$0xff]  ;;  %v4707_v19 = vld [vmem:[%s5728_s3 + $0x3c0] sm:$0xff] }
 0x147   : > { %1582 = vmatprep.subr.mxu1 %v4469_v57  ;;  %1165 = vmatmul.mubr.f32.gmra.mxu0 %v4460_v23  ;;  %v4493_v22 = vmax.f32 %v1014_v54, 0.0 }
 0x148   : > { %1275 = vmatpush1.msra.mxu0 %v4211_v62  ;;  %1583 = vmatpush1.msra.mxu1 %v4477_v58  ;;  %v4516_v62 = vld [vmem:[%s5728_s3 + $0x288] sm:$0xff] }
 0x149   : > { %1276 = vmatprep.subr.mxu0 %v4217_v63  ;;  %1584 = vmatprep.subr.mxu1 %v4484_v59  ;;  %v4523_v63 = vld [vmem:[%s5728_s3 + $0x280] sm:$0xff] }
 0x14a   : > { %1277 = vmatpush1.msra.mxu0 %v4222_v0  ;;  %1585 = vmatpush1.msra.mxu1 %v4491_v60  ;;  %v4532_v0 = vld [vmem:[%s5728_s3 + $0x278] sm:$0xff] }
 0x14b   : > { %1170 = vmatprep.mubr.f32.mxu0 %v5768_v29  ;;  %1278 = vmatprep.subr.mxu0 %v4227_v1  ;;  %v4541_v1 = vld [vmem:[%s5728_s3 + $0x270] sm:$0xff] }
 0x14c   : > { %1586 = vmatprep.subr.mxu1 %v4502_v61  ;;  %1171 = vmatmul.mubr.f32.gmra.mxu0 %v4493_v22 }
 0x14d   : > { %1279 = vmatpush1.msra.mxu0 %v4233_v2  ;;  %1587 = vmatpush1.msra.mxu1 %v4509_v3  ;;  %v4548_v2 = vld [vmem:[%s5728_s3 + $0x268] sm:$0xff] }
 0x14e   : > { %1280 = vmatprep.subr.mxu0 %v4241_v4  ;;  %1588 = vmatprep.subr.mxu1 %v4516_v62  ;;  %v4555_v4 = vld [vmem:[%s5728_s3 + $0x260] sm:$0xff] }
 0x14f   : > { %1281 = vmatpush1.msra.mxu0 %v4247_v5  ;;  %1589 = vmatpush1.msra.mxu1 %v4523_v63  ;;  %v4562_v5 = vld [vmem:[%s5728_s3 + $0x258] sm:$0xff] }
 0x150   : > { %1282 = vmatprep.subr.mxu0 %v4253_v6  ;;  %1425 = vmatprep.mubr.f32.mxu1 %v5768_v29  ;;  %v4571_v6 = vld [vmem:[%s5728_s3 + $0x250] sm:$0xff] }
 0x151   : > { %1590 = vmatprep.subr.mxu1 %v4532_v0  ;;  %1283 = vmatpush1.msra.mxu0 %v4259_v7  ;;  %v5769_v7 = vld [vmem:[#allocation5_spill] sm:$0xff] }
 0x152   : > { %1426 = vmatmul.mubr.f32.gmra.mxu1 %v4429_v41  ;;  %1284 = vmatprep.subr.mxu0 %v4265_v10  ;;  %v4578_v10 = vld [vmem:[%s5728_s3 + $0x248] sm:$0xff] }
 0x153   : > { %1591 = vmatpush1.msra.mxu1 %v4541_v1  ;;  %1285 = vmatpush1.msra.mxu0 %v4271_v11  ;;  %v5770_v11 = vld [vmem:[#allocation6_spill] sm:$0xff] }
 0x154   : > { %1592 = vmatprep.subr.mxu1 %v4548_v2  ;;  %1286 = vmatprep.subr.mxu0 %v4277_v12  ;;  %v4585_v12 = vld [vmem:[%s5728_s3 + $0x240] sm:$0xff] }
 0x155   : > { %1593 = vmatpush1.msra.mxu1 %v4555_v4  ;;  %1431 = vmatprep.mubr.f32.mxu1 %v5768_v29 }
 0x156   : > { %1594 = vmatprep.subr.mxu1 %v4562_v5  ;;  %1287 = vmatpush1.msra.mxu0 %v5769_v7  ;;  %v4742_v7 = vld [vmem:[%s5728_s3 + $0x3a0] sm:$0xff] }
 0x157   : > { %1432 = vmatmul.mubr.f32.gmra.mxu1 %v4460_v23  ;;  %1288 = vmatprep.subr.mxu0 %v5770_v11  ;;  %v4751_v11 = vld [vmem:[%s5728_s3 + $0x398] sm:$0xff] }
 0x158   : > { %1595 = vmatpush1.msra.mxu1 %v4571_v6  ;;  %1289 = vmatpush1.msra.mxu0 %v5771_v8  ;;  %v4769_v8 = vld [vmem:[%s5728_s3 + $0x388] sm:$0xff] }
 0x159   : > { %1596 = vmatprep.subr.mxu1 %v4578_v10  ;;  %1290 = vmatprep.subr.mxu0 %v5772_v9  ;;  %v4804_v9 = vld [vmem:[%s5728_s3 + $0x360] sm:$0xff] }
 0x15a   : > { %1597 = vmatpush1.msra.mxu1 %v4585_v12  ;;  %1437 = vmatprep.mubr.f32.mxu1 %v5768_v29 }
 0x15b   : > { %1598 = vmatprep.subr.mxu1 %v4592_v16  ;;  %1291 = vmatpush1.msra.mxu0 %v5773_v55  ;;  %v4890_v55 = vld [vmem:[%s5728_s3 + $0x300] sm:$0xff] }
 0x15c   : > { %1438 = vmatmul.mubr.f32.gmra.mxu1 %v4493_v22  ;;  %1292 = vmatprep.subr.mxu0 %v5774_v15  ;;  %v4906_v15 = vld [vmem:[%s5728_s3 + $0x4f0] sm:$0xff] }
 0x15d   : > { %1599 = vmatpush1.msra.mxu1 %v4601_v14  ;;  %1293 = vmatpush1.msra.mxu0 %v5775_v13  ;;  %v4922_v13 = vld [vmem:[%s5728_s3 + $0x4e0] sm:$0xff] }
 0x15e   : > { %1600 = vmatprep.subr.mxu1 %v4608_v17  ;;  %1294 = vmatprep.subr.mxu0 %v5776_v26  ;;  %v4945_v26 = vld [vmem:[%s5728_s3 + $0x4c8] sm:$0xff] }
 0x15f   : > { %1601 = vmatpush1.msra.mxu1 %v4615_v56  ;;  %1295 = vmatpush1.msra.mxu0 %v5777_v30  ;;  %v4963_v30 = vld [vmem:[%s5728_s3 + $0x4b8] sm:$0xff] }
 0x160   : > { %1602 = vmatprep.subr.mxu1 %v4622_v21  ;;  %1296 = vmatprep.subr.mxu0 %v5778_v33  ;;  %v4977_v33 = vld [vmem:[%s5728_s3 + $0x4a8] sm:$0xff] }
 0x161   : > { %1603 = vmatpush1.msra.mxu1 %v4629_v27  ;;  %1297 = vmatpush1.msra.mxu0 %v5779_v35  ;;  %v4990_v35 = vld [vmem:[%s5728_s3 + $0x4a0] sm:$0xff] }
 0x162   : > { %1604 = vmatprep.subr.mxu1 %v4636_v24  ;;  %1330 = vmatprep.mubr.f32.mxu0 %v5768_v29 }
 0x163   : > { %1605 = vmatpush1.msra.mxu1 %v4643_v34  ;;  %1638 = vmatprep.mubr.f32.mxu1 %v5768_v29 }
 0x164   : > { %1331 = vmatmul.mubr.f32.vlgmr.msra.gmra.mxu0 %v4366_v20  ;;  %1477 = vmatprep.subr.mxu0 %v4403_v45  ;;  %v947_v45 = vpop.f32.mrf.mxu1 }
 0x165   : > { %1639 = vmatmul.mubr.f32.vlgmr.msra.gmra.mxu1 %v4429_v41  ;;  %1801 = vmatprep.subr.mxu1 %v4652_v36  ;;  %v1003_v48 = vmax.f32 %v945_v28, %v947_v45  ;;  %v5014_v28 = vld [vmem:[%s5728_s3 + $0x488] sm:$0xff]  ;;  %v5050_v45 = vld [vmem:[%s5728_s3 + $0x460] sm:$0xff] }
 0x166   : > { %1478 = vmatpush1.msra.mxu0 %v4414_v31  ;;  %1802 = vmatpush1.msra.mxu1 %v4659_v49  ;;  %v4684_v31 = vld [vmem:[%s5728_s3 + $0x3d8] sm:$0xff] }
 0x167   : > { %1479 = vmatprep.subr.mxu0 %v4419_v25  ;;  %1803 = vmatprep.subr.mxu1 %v4666_v50  ;;  %v4691_v25 = vld [vmem:[%s5728_s3 + $0x3d0] sm:$0xff]  ;;  %v1009_v54 = vmax.f32 %v997_v47, %v1003_v48  ;;  %v5071_v48 = vld [vmem:[%s5728_s3 + $0x448] sm:$0xff] }
 0x168   : > { %1336 = vmatprep.mubr.f32.mxu0 %v5768_v29  ;;  %1480 = vmatpush1.msra.mxu0 %v4425_v37  ;;  %v4698_v37 = vld [vmem:[%s5728_s3 + $0x3c8] sm:$0xff]  ;;  %v5064_v47 = vld [vmem:[%s5728_s3 + $0x450] sm:$0xff] }
 0x169   : > { %1644 = vmatprep.mubr.f32.mxu1 %v5768_v29  ;;  %1804 = vmatpush1.msra.mxu1 %v4675_v44 }
 0x16a   : > { %1337 = vmatmul.mubr.f32.gmra.mxu0 %v4377_v32  ;;  %1481 = vmatprep.subr.mxu0 %v4436_v43  ;;  %v4716_v43 = vld [vmem:[%s5728_s3 + $0x3b8] sm:$0xff] }
 0x16b   : > { %1645 = vmatmul.mubr.f32.gmra.mxu1 %v4460_v23  ;;  %1805 = vmatprep.subr.mxu1 %v4684_v31 }
 0x16c   : > { %1482 = vmatpush1.msra.mxu0 %v4443_v46  ;;  %1806 = vmatpush1.msra.mxu1 %v4691_v25  ;;  %v985_v46 = vadd.f32 %v4350_v18, %v4396_v42  ;;  %v1015_v42 = vadd.f32 %v4350_v18, %v1009_v54  ;;  %v5099_v54 = vld [vmem:[%s5728_s3 + $0x428] sm:$0xff] }
 0x16d   : > { %1483 = vmatprep.subr.mxu0 %v4451_v53  ;;  %1807 = vmatprep.subr.mxu1 %v4698_v37  ;;  %v4725_v53 = vld [vmem:[%s5728_s3 + $0x3b0] sm:$0xff] }
 0x16e   : > { %1342 = vmatprep.mubr.f32.mxu0 %v5768_v29  ;;  %1484 = vmatpush1.msra.mxu0 %v4458_v39  ;;  %v4732_v39 = vld [vmem:[%s5728_s3 + $0x3a8] sm:$0xff] }
 0x16f   : > { %1650 = vmatprep.mubr.f32.mxu1 %v5768_v29  ;;  %1808 = vmatpush1.msra.mxu1 %v4707_v19 }
 0x170   : > { %1343 = vmatmul.mubr.f32.gmra.mxu0 %v4388_v38  ;;  %1485 = vmatprep.subr.mxu0 %v4469_v57  ;;  %v4744_v57 = vmax.f32 %v985_v46, 0.0  ;;  %v951_v46 = vpop.f32.mrf.mxu1 }
 0x171   : > { %1651 = vmatmul.mubr.f32.gmra.mxu1 %v4493_v22  ;;  %1809 = vmatprep.subr.mxu1 %v4716_v43 }
 0x172   : > { %1486 = vmatpush1.msra.mxu0 %v4477_v58  ;;  %1810 = vmatpush1.msra.mxu1 %v4725_v53  ;;  %v4760_v58 = vld [vmem:[%s5728_s3 + $0x390] sm:$0xff] }
 0x173   : > { %1487 = vmatprep.subr.mxu0 %v4484_v59  ;;  %1811 = vmatprep.subr.mxu1 %v4732_v39  ;;  %v4762_v59 = vmax.f32 %v1015_v42, 0.0  ;;  %v5120_v42 = vld [vmem:[%s5728_s3 + $0x410] sm:$0xff] }
 0x174   : > { %1348 = vmatprep.mubr.f32.mxu0 %v5768_v29  ;;  %1488 = vmatpush1.msra.mxu0 %v4491_v60  ;;  %v4776_v60 = vld [vmem:[%s5728_s3 + $0x380] sm:$0xff] }
 0x175   : > { %1812 = vmatpush1.msra.mxu1 %v4742_v7  ;;  %1349 = vmatmul.mubr.f32.gmra.mxu0 %v4744_v57 }
 0x176   : > { %1489 = vmatprep.subr.mxu0 %v4502_v61  ;;  %1813 = vmatprep.subr.mxu1 %v4751_v11  ;;  %v4783_v61 = vld [vmem:[%s5728_s3 + $0x378] sm:$0xff] }
 0x177   : > { %1490 = vmatpush1.msra.mxu0 %v4509_v3  ;;  %1656 = vmatprep.mubr.f32.mxu1 %v5768_v29  ;;  %v4790_v3 = vld [vmem:[%s5728_s3 + $0x370] sm:$0xff] }
 0x178   : > { %1814 = vmatpush1.msra.mxu1 %v4760_v58  ;;  %1491 = vmatprep.subr.mxu0 %v4516_v62  ;;  %v4797_v62 = vld [vmem:[%s5728_s3 + $0x368] sm:$0xff] }
 0x179   : > { %1657 = vmatmul.mubr.f32.gmra.mxu1 %v4762_v59  ;;  %1815 = vmatprep.subr.mxu1 %v4769_v8 }
 0x17a   : > { %1492 = vmatpush1.msra.mxu0 %v4523_v63  ;;  %1816 = vmatpush1.msra.mxu1 %v4776_v60  ;;  %v4811_v63 = vld [vmem:[%s5728_s3 + $0x358] sm:$0xff] }
 0x17b   : > { %1493 = vmatprep.subr.mxu0 %v4532_v0  ;;  %1817 = vmatprep.subr.mxu1 %v4783_v61  ;;  %v4818_v0 = vld [vmem:[%s5728_s3 + $0x350] sm:$0xff] }
 0x17c   : > { %1494 = vmatpush1.msra.mxu0 %v4541_v1  ;;  %1818 = vmatpush1.msra.mxu1 %v4790_v3  ;;  %v4825_v1 = vld [vmem:[%s5728_s3 + $0x348] sm:$0xff] }
 0x17d   : > { %1495 = vmatprep.subr.mxu0 %v4548_v2  ;;  %1819 = vmatprep.subr.mxu1 %v4797_v62  ;;  %v4832_v2 = vld [vmem:[%s5728_s3 + $0x340] sm:$0xff] }
 0x17e   : > { %1496 = vmatpush1.msra.mxu0 %v4555_v4  ;;  %1820 = vmatpush1.msra.mxu1 %v4804_v9  ;;  %v4839_v4 = vld [vmem:[%s5728_s3 + $0x338] sm:$0xff] }
 0x17f   : > { %1497 = vmatprep.subr.mxu0 %v4562_v5  ;;  %1821 = vmatprep.subr.mxu1 %v4811_v63  ;;  %v4846_v5 = vld [vmem:[%s5728_s3 + $0x330] sm:$0xff] }
 0x180   : > { %1498 = vmatpush1.msra.mxu0 %v4571_v6  ;;  %1822 = vmatpush1.msra.mxu1 %v4818_v0  ;;  %v4853_v6 = vld [vmem:[%s5728_s3 + $0x328] sm:$0xff] }
 0x181   : > { %1499 = vmatprep.subr.mxu0 %v4578_v10  ;;  %1823 = vmatprep.subr.mxu1 %v4825_v1  ;;  %v4860_v10 = vld [vmem:[%s5728_s3 + $0x320] sm:$0xff] }
 0x182   : > { %1500 = vmatpush1.msra.mxu0 %v4585_v12  ;;  %1824 = vmatpush1.msra.mxu1 %v4832_v2  ;;  %v4867_v12 = vld [vmem:[%s5728_s3 + $0x318] sm:$0xff] }
 0x183   : > { %1501 = vmatprep.subr.mxu0 %v4592_v16  ;;  %1825 = vmatprep.subr.mxu1 %v4839_v4  ;;  %v4874_v16 = vld [vmem:[%s5728_s3 + $0x310] sm:$0xff] }
 0x184   : > { %1502 = vmatpush1.msra.mxu0 %v4601_v14  ;;  %1826 = vmatpush1.msra.mxu1 %v4846_v5  ;;  %v4881_v14 = vld [vmem:[%s5728_s3 + $0x308] sm:$0xff] }
 0x185   : > { %1503 = vmatprep.subr.mxu0 %v4608_v17  ;;  %1827 = vmatprep.subr.mxu1 %v4853_v6  ;;  %v4899_v17 = vld [vmem:[%s5728_s3 + $0x4f8] sm:$0xff] }
 0x186   : > { %1504 = vmatpush1.msra.mxu0 %v4615_v56  ;;  %1828 = vmatpush1.msra.mxu1 %v4860_v10  ;;  %v4913_v56 = vld [vmem:[%s5728_s3 + $0x4e8] sm:$0xff] }
 0x187   : > { %1505 = vmatprep.subr.mxu0 %v4622_v21  ;;  %1829 = vmatprep.subr.mxu1 %v4867_v12  ;;  %v4938_v21 = vld [vmem:[%s5728_s3 + $0x4d0] sm:$0xff] }
 0x188   : > { %1506 = vmatpush1.msra.mxu0 %v4629_v27  ;;  %1830 = vmatpush1.msra.mxu1 %v4874_v16  ;;  %v4954_v27 = vld [vmem:[%s5728_s3 + $0x4c0] sm:$0xff] }
 0x189   : > { %1507 = vmatprep.subr.mxu0 %v4636_v24  ;;  %1831 = vmatprep.subr.mxu1 %v4881_v14  ;;  %v4970_v24 = vld [vmem:[%s5728_s3 + $0x4b0] sm:$0xff] }
 0x18a   : > { %1508 = vmatpush1.msra.mxu0 %v4643_v34  ;;  %1541 = vmatprep.mubr.f32.mxu0 %v5768_v29  ;;  %v4983_v34 = vadd.f32 %v4350_v18, %v4408_v51  ;;  %v4999_v51 = vld [vmem:[%s5728_s3 + $0x498] sm:$0xff] }
 0x18b   : > { %1832 = vmatpush1.msra.mxu1 %v4890_v55  ;;  %1865 = vmatprep.mubr.f32.mxu1 %v5768_v29 }
 0x18c   : > { %1542 = vmatmul.mubr.f32.vlgmr.msra.gmra.mxu0 %v4366_v20  ;;  %1704 = vmatprep.subr.mxu0 %v4652_v36  ;;  %v4931_v20 = vld [vmem:[%s5728_s3 + $0x4d8] sm:$0xff]  ;;  %v992_v36 = vmax.f32 %v4983_v34, 0.0 }
 0x18d   : > { %1866 = vmatmul.mubr.f32.vlgmr.msra.gmra.mxu1 %v4377_v32  ;;  %2028 = vmatprep.subr.mxu1 %v4899_v17 }
 0x18e   : > { %1705 = vmatpush1.msra.mxu0 %v4659_v49  ;;  %2029 = vmatpush1.msra.mxu1 %v4906_v15  ;;  %v5022_v49 = vld [vmem:[%s5728_s3 + $0x480] sm:$0xff] }
 0x18f   : > { %1706 = vmatprep.subr.mxu0 %v4666_v50  ;;  %2030 = vmatprep.subr.mxu1 %v4913_v56  ;;  %v5029_v50 = vld [vmem:[%s5728_s3 + $0x478] sm:$0xff] }
 0x190   : > { %1547 = vmatprep.mubr.f32.mxu0 %v5768_v29  ;;  %1707 = vmatpush1.msra.mxu0 %v4675_v44  ;;  %v5036_v44 = vld [vmem:[%s5728_s3 + $0x470] sm:$0xff] }
 0x191   : > { %1871 = vmatprep.mubr.f32.mxu1 %v5768_v29  ;;  %2031 = vmatpush1.msra.mxu1 %v4922_v13 }
 0x192   : > { %1548 = vmatmul.mubr.f32.gmra.mxu0 %v4377_v32  ;;  %1708 = vmatprep.subr.mxu0 %v4684_v31  ;;  %v5057_v31 = vld [vmem:[%s5728_s3 + $0x458] sm:$0xff] }
 0x193   : > { %1872 = vmatmul.mubr.f32.gmra.mxu1 %v4388_v38  ;;  %2032 = vmatprep.subr.mxu1 %v4931_v20 }
 0x194   : > { %1709 = vmatpush1.msra.mxu0 %v4691_v25  ;;  %2033 = vmatpush1.msra.mxu1 %v4938_v21  ;;  %v5078_v25 = vld [vmem:[%s5728_s3 + $0x440] sm:$0xff] }
 0x195   : > { %1710 = vmatprep.subr.mxu0 %v4698_v37  ;;  %2034 = vmatprep.subr.mxu1 %v4945_v26  ;;  %v5085_v37 = vld [vmem:[%s5728_s3 + $0x438] sm:$0xff] }
 0x196   : > { %1553 = vmatprep.mubr.f32.mxu0 %v5768_v29  ;;  %1711 = vmatpush1.msra.mxu0 %v4707_v19  ;;  %v5092_v19 = vld [vmem:[%s5728_s3 + $0x430] sm:$0xff] }
 0x197   : > { %1877 = vmatprep.mubr.f32.mxu1 %v5768_v29  ;;  %2035 = vmatpush1.msra.mxu1 %v4954_v27 }
 0x198   : > { %1554 = vmatmul.mubr.f32.gmra.mxu0 %v4388_v38  ;;  %1712 = vmatprep.subr.mxu0 %v4716_v43  ;;  %v819_v43 = vpop.f32.mrf.mxu0 }
 0x199   : > { %1878 = vmatmul.mubr.f32.gmra.mxu1 %v4744_v57  ;;  %2036 = vmatprep.subr.mxu1 %v4963_v30 }
 0x19a   : > { %1713 = vmatpush1.msra.mxu0 %v4725_v53  ;;  %2037 = vmatpush1.msra.mxu1 %v4970_v24  ;;  %v5106_v53 = vld [vmem:[%s5728_s3 + $0x420] sm:$0xff] }
 0x19b   : > { %1714 = vmatprep.subr.mxu0 %v4732_v39  ;;  %2038 = vmatprep.subr.mxu1 %v4977_v33  ;;  %v5113_v39 = vld [vmem:[%s5728_s3 + $0x418] sm:$0xff] }
 0x19c   : > { %1559 = vmatprep.mubr.f32.mxu0 %v5768_v29  ;;  %1715 = vmatpush1.msra.mxu0 %v4742_v7  ;;  %v5127_v7 = vld [vmem:[%s5728_s3 + $0x408] sm:$0xff] }
 0x19d   : > { %1883 = vmatprep.mubr.f32.mxu1 %v5768_v29  ;;  %2039 = vmatpush1.msra.mxu1 %v4990_v35 }
 0x19e   : > { %1560 = vmatmul.mubr.f32.gmra.mxu0 %v4744_v57  ;;  %1716 = vmatprep.subr.mxu0 %v4751_v11  ;;  %v821_v11 = vpop.f32.mrf.mxu0 }
 0x19f   : > { %1884 = vmatmul.mubr.f32.gmra.mxu1 %v992_v36  ;;  %2040 = vmatprep.subr.mxu1 %v4999_v51 }
 0x1a0   : > { %1717 = vmatpush1.msra.mxu0 %v4760_v58  ;;  %2041 = vmatpush1.msra.mxu1 %v5007_v40  ;;  %v953_v58 = vpop.f32.mrf.mxu1 }
 0x1a1   : > { %1718 = vmatprep.subr.mxu0 %v4769_v8  ;;  %2042 = vmatprep.subr.mxu1 %v5014_v28  ;;  %v2948_v8 = vld [vmem:[%s5728_s3 + $0x400] sm:$0xff] }
 0x1a2   : > { %1719 = vmatpush1.msra.mxu0 %v4776_v60  ;;  %2043 = vmatpush1.msra.mxu1 %v5022_v49  ;;  %v998_v60 = vmax.f32 %v819_v43, %v821_v11  ;;  %v2983_v43 = vld [vmem:[%s5730_s5 + $0x90] sm:$0xff] }
 0x1a3   : > { %1720 = vmatprep.subr.mxu0 %v4783_v61  ;;  %2044 = vmatprep.subr.mxu1 %v5029_v50  ;;  %v1004_v61 = vmax.f32 %v951_v46, %v953_v58  ;;  %v2152_v46 = vld [vmem:[%s5730_s5] sm:$0xff] }
 0x1a4   : > { %1721 = vmatpush1.msra.mxu0 %v4790_v3  ;;  %2045 = vmatpush1.msra.mxu1 %v5036_v44 }
 0x1a5   : > { %1722 = vmatprep.subr.mxu0 %v4797_v62  ;;  %2046 = vmatprep.subr.mxu1 %v5043_v52  ;;  %v1010_v3 = vmax.f32 %v998_v60, %v1004_v61 }
 0x1a6   : > { %1723 = vmatpush1.msra.mxu0 %v4804_v9  ;;  %2047 = vmatpush1.msra.mxu1 %v5050_v45 }
 0x1a7   : > { %1724 = vmatprep.subr.mxu0 %v4811_v63  ;;  %2048 = vmatprep.subr.mxu1 %v5057_v31 }
 0x1a8   : > { %1725 = vmatpush1.msra.mxu0 %v4818_v0  ;;  %2049 = vmatpush1.msra.mxu1 %v5064_v47  ;;  %v2166_v0 = vld [vmem:[%s5730_s5 + $0x70] sm:$0xff] }
 0x1a9   : > { %1726 = vmatprep.subr.mxu0 %v4825_v1  ;;  %2050 = vmatprep.subr.mxu1 %v5071_v48 }
 0x1aa   : > { %1727 = vmatpush1.msra.mxu0 %v4832_v2  ;;  %2051 = vmatpush1.msra.mxu1 %v5078_v25  ;;  %v2996_v2 = vld [vmem:[%s5730_s5 + $0xf8] sm:$0xff] }
 0x1ab   : > { %1728 = vmatprep.subr.mxu0 %v4839_v4  ;;  %2052 = vmatprep.subr.mxu1 %v5085_v37  ;;  %v2165_v4 = vld [vmem:[%s5730_s5 + $0x68] sm:$0xff] }
 0x1ac   : > { %1729 = vmatpush1.msra.mxu0 %v4846_v5  ;;  %2053 = vmatpush1.msra.mxu1 %v5092_v19 }
 0x1ad   : > { %1730 = vmatprep.subr.mxu0 %v4853_v6  ;;  %2054 = vmatprep.subr.mxu1 %v5099_v54  ;;  %v2995_v6 = vld [vmem:[%s5730_s5 + $0xf0] sm:$0xff] }
 0x1ae   : > { %1731 = vmatpush1.msra.mxu0 %v4860_v10  ;;  %2055 = vmatpush1.msra.mxu1 %v5106_v53  ;;  %v2164_v10 = vld [vmem:[%s5730_s5 + $0x60] sm:$0xff] }
 0x1af   : > { %1732 = vmatprep.subr.mxu0 %v4867_v12  ;;  %2056 = vmatprep.subr.mxu1 %v5113_v39 }
 0x1b0   : > { %1733 = vmatpush1.msra.mxu0 %v4874_v16  ;;  %2057 = vmatpush1.msra.mxu1 %v5120_v42  ;;  %v2994_v16 = vld [vmem:[%s5730_s5 + $0xe8] sm:$0xff] }
 0x1b1   : > { %1734 = vmatprep.subr.mxu0 %v4881_v14  ;;  %2058 = vmatprep.subr.mxu1 %v5127_v7  ;;  %v2163_v14 = vld [vmem:[%s5730_s5 + $0x58] sm:$0xff] }
 0x1b2   : > { %1735 = vmatpush1.msra.mxu0 %v4890_v55  ;;  %1768 = vmatprep.mubr.f32.mxu0 %v5768_v29 }
 0x1b3   : > { %2059 = vmatpush1.msra.mxu1 %v2948_v8  ;;  %2092 = vmatprep.mubr.f32.mxu1 %v5768_v29 }
 0x1b4   : > { %1769 = vmatmul.mubr.f32.vlgmr.msra.gmra.mxu0 %v4429_v41  ;;  %1931 = vmatprep.subr.mxu0 %v4899_v17  ;;  %v1016_v41 = vadd.f32 %v4350_v18, %v1010_v3 }
 0x1b5   : > { %2093 = vmatmul.mubr.f32.vlgmr.msra.gmra.mxu1 %v4460_v23  ;;  %1932 = vmatpush1.msra.mxu0 %v4906_v15  ;;  %v2993_v15 = vld [vmem:[%s5730_s5 + $0xe0] sm:$0xff] }
 0x1b6   : > { %1933 = vmatprep.subr.mxu0 %v4913_v56  ;;  %1774 = vmatprep.mubr.f32.mxu0 %v5768_v29  ;;  %v2162_v56 = vld [vmem:[%s5730_s5 + $0x50] sm:$0xff] }
 0x1b7   : > { %1934 = vmatpush1.msra.mxu0 %v4922_v13  ;;  %2098 = vmatprep.mubr.f32.mxu1 %v5768_v29 }
 0x1b8   : > { %1775 = vmatmul.mubr.f32.gmra.mxu0 %v4460_v23  ;;  %1935 = vmatprep.subr.mxu0 %v4931_v20  ;;  %v1022_v23 = vmax.f32 %v1016_v41, 0.0 }
 0x1b9   : > { %2099 = vmatmul.mubr.f32.gmra.mxu1 %v4493_v22  ;;  %1936 = vmatpush1.msra.mxu0 %v4938_v21  ;;  %v2992_v21 = vld [vmem:[%s5730_s5 + $0xd8] sm:$0xff] }
 0x1ba   : > { %1937 = vmatprep.subr.mxu0 %v4945_v26  ;;  %1780 = vmatprep.mubr.f32.mxu0 %v5768_v29  ;;  %v2161_v26 = vld [vmem:[%s5730_s5 + $0x48] sm:$0xff] }
 0x1bb   : > { %1938 = vmatpush1.msra.mxu0 %v4954_v27  ;;  %2104 = vmatprep.mubr.f32.mxu1 %v5768_v29 }
 0x1bc   : > { %1781 = vmatmul.mubr.f32.gmra.mxu0 %v4493_v22  ;;  %1939 = vmatprep.subr.mxu0 %v4963_v30 }
 0x1bd   : > { %2105 = vmatmul.mubr.f32.gmra.mxu1 %v4762_v59  ;;  %1940 = vmatpush1.msra.mxu0 %v4970_v24  ;;  %v2991_v24 = vld [vmem:[%s5730_s5 + $0xd0] sm:$0xff] }
 0x1be   : > { %1941 = vmatprep.subr.mxu0 %v4977_v33  ;;  %1786 = vmatprep.mubr.f32.mxu0 %v5768_v29  ;;  %v2160_v33 = vld [vmem:[%s5730_s5 + $0x40] sm:$0xff] }
 0x1bf   : > { %1942 = vmatpush1.msra.mxu0 %v4990_v35  ;;  %2110 = vmatprep.mubr.f32.mxu1 %v5768_v29 }
 0x1c0   : > { %1787 = vmatmul.mubr.f32.gmra.mxu0 %v4762_v59  ;;  %1943 = vmatprep.subr.mxu0 %v4999_v51 }
 0x1c1   : > { %2111 = vmatmul.mubr.f32.gmra.mxu1 %v1022_v23  ;;  %1944 = vmatpush1.msra.mxu0 %v5007_v40  ;;  %v2159_v40 = vld [vmem:[%s5730_s5 + $0x38] sm:$0xff] }
 0x1c2   : > { %1945 = vmatprep.subr.mxu0 %v5014_v28  ;;  %1995 = vmatprep.mubr.f32.mxu0 %v5768_v29  ;;  %v2989_v28 = vld [vmem:[%s5730_s5 + $0xc0] sm:$0xff] }
 0x1c3   : > { %1946 = vmatpush1.msra.mxu0 %v5022_v49  ;;  %3170 = vmatprep.subr.mxu1 %v5768_v29  ;;  %v2158_v49 = vld [vmem:[%s5730_s5 + $0x30] sm:$0xff] }
 0x1c4   : > { %1947 = vmatprep.subr.mxu0 %v5029_v50  ;;  %v2988_v50 = vld [vmem:[%s5730_s5 + $0xb8] sm:$0xff]  ;;  %3202 = vmatprep.mubr.msk.f32.mxu1 %vm3438_vm2, %v5768_v29 }
 0x1c5   : > { %1948 = vmatpush1.msra.mxu0 %v5036_v44  ;;  %v2157_v44 = vld [vmem:[%s5730_s5 + $0x28] sm:$0xff] }
 0x1c6   : > { %1949 = vmatprep.subr.mxu0 %v5043_v52  ;;  %v2987_v52 = vld [vmem:[%s5730_s5 + $0xb0] sm:$0xff] }
 0x1c7   : > { %1950 = vmatpush1.msra.mxu0 %v5050_v45  ;;  %v2156_v45 = vld [vmem:[%s5730_s5 + $0x20] sm:$0xff] }
 0x1c8   : > { %1951 = vmatprep.subr.mxu0 %v5057_v31  ;;  %v2986_v31 = vld [vmem:[%s5730_s5 + $0xa8] sm:$0xff] }
 0x1c9   : > { %1952 = vmatpush1.msra.mxu0 %v5064_v47  ;;  %v2155_v47 = vld [vmem:[%s5730_s5 + $0x18] sm:$0xff] }
 0x1ca   : > { %1953 = vmatprep.subr.mxu0 %v5071_v48  ;;  %v2985_v48 = vld [vmem:[%s5730_s5 + $0xa0] sm:$0xff] }
 0x1cb   : > { %1954 = vmatpush1.msra.mxu0 %v5078_v25  ;;  %v2154_v25 = vld [vmem:[%s5730_s5 + $0x10] sm:$0xff] }
 0x1cc   : > { %1955 = vmatprep.subr.mxu0 %v5085_v37  ;;  %v2984_v37 = vld [vmem:[%s5730_s5 + $0x98] sm:$0xff] }
 0x1cd   : > { %1956 = vmatpush1.msra.mxu0 %v5092_v19  ;;  %v5197_v18 = vpop.f32.mrf.mxu1  ;;  %v2153_v19 = vld [vmem:[%s5730_s5 + $0x8] sm:$0xff] }
 0x1ce   : > { %1957 = vmatprep.subr.mxu0 %v5099_v54 }
 0x1cf   : > { %1958 = vmatpush1.msra.mxu0 %v5106_v53  ;;  %v5199_v22 = vpop.f32.mrf.mxu1  ;;  %v2982_v53 = vld [vmem:[%s5730_s5 + $0x88] sm:$0xff] }
 0x1d0   : > { %1959 = vmatprep.subr.mxu0 %v5113_v39 }
 0x1d1   : > { %1960 = vmatpush1.msra.mxu0 %v5120_v42  ;;  %v2981_v42 = vld [vmem:[%s5730_s5 + $0x80] sm:$0xff] }
 0x1d2   : > { %1961 = vmatprep.subr.mxu0 %v5127_v7 }
 0x1d3   : > { %1962 = vmatpush1.msra.mxu0 %v2948_v8 }
 0x1d4   : > { %1996 = vmatmul.mubr.f32.vlgmr.msra.gmra.mxu0 %v4377_v32  ;;  %3135 = vmatprep.subr.mxu0 %v5768_v29 }
 0x1d5   : > { %2001 = vmatprep.mubr.f32.mxu0 %v5768_v29  ;;  %3136 = vmatpush3.msra.mxu0 %v2996_v2 }
 0x1d6   : > { %3137 = vmatprep.subr.mxu0 %v5768_v29 }
 0x1d7   : > { %3138 = vmatpush3.msra.mxu0 %v2995_v6 }
 0x1d8   : > { %2002 = vmatmul.mubr.f32.gmra.mxu0 %v4388_v38  ;;  %3139 = vmatprep.subr.mxu0 %v5768_v29 }
 0x1d9   : > { %2007 = vmatprep.mubr.f32.mxu0 %v5768_v29  ;;  %3140 = vmatpush3.msra.mxu0 %v2994_v16 }
 0x1da   : > { %3141 = vmatprep.subr.mxu0 %v5768_v29 }
 0x1db   : > { %v5201_v32 = vpop.f32.mrf.mxu1  ;;  %3142 = vmatpush3.msra.mxu0 %v2993_v15 }
 0x1dc   : > { %2008 = vmatmul.mubr.f32.gmra.mxu0 %v4744_v57  ;;  %v2167_v57 = vld [vmem:[%s5730_s5 + $0x78] sm:$0xff]  ;;  %3143 = vmatprep.subr.mxu0 %v5768_v29 }
 0x1dd   : > { %2013 = vmatprep.mubr.f32.mxu0 %v5768_v29  ;;  %v5205_v62 = vpop.f32.mrf.mxu1  ;;  %3171 = vmatpush3.msra.mxu1 %v2167_v57 }
 0x1de   : > { %3172 = vmatprep.subr.mxu1 %v5768_v29  ;;  %3144 = vmatpush3.msra.mxu0 %v2992_v21 }
 0x1df   : > { %3173 = vmatpush3.msra.mxu1 %v2166_v0  ;;  %3145 = vmatprep.subr.mxu0 %v5768_v29 }
 0x1e0   : > { %2014 = vmatmul.mubr.f32.gmra.mxu0 %v992_v36  ;;  %3174 = vmatprep.subr.mxu1 %v5768_v29  ;;  %v2990_v36 = vld [vmem:[%s5730_s5 + $0xc8] sm:$0xff] }
 0x1e1   : > { %v1255_v9 = vpop.f32.mrf.mxu1  ;;  %3175 = vmatpush3.msra.mxu1 %v2165_v4  ;;  %3146 = vmatpush3.msra.mxu0 %v2991_v24 }
 0x1e2   : > { %3176 = vmatprep.subr.mxu1 %v5768_v29  ;;  %3147 = vmatprep.subr.mxu0 %v5768_v29 }
 0x1e3   : > { %v1257_v5 = vpop.f32.mrf.mxu1  ;;  %3177 = vmatpush3.msra.mxu1 %v2164_v10  ;;  %3148 = vmatpush3.msra.mxu0 %v2990_v36 }
 0x1e4   : > { %3178 = vmatprep.subr.mxu1 %v5768_v29  ;;  %3149 = vmatprep.subr.mxu0 %v5768_v29 }
 0x1e5   : > { %3179 = vmatpush3.msra.mxu1 %v2163_v14  ;;  %3150 = vmatpush3.msra.mxu0 %v2989_v28 }
 0x1e6   : > { %3180 = vmatprep.subr.mxu1 %v5768_v29  ;;  %3151 = vmatprep.subr.mxu0 %v5768_v29 }
 0x1e7   : > { %v1261_v13 = vpop.f32.mrf.mxu1  ;;  %3181 = vmatpush3.msra.mxu1 %v2162_v56  ;;  %3152 = vmatpush3.msra.mxu0 %v2988_v50 }
 0x1e8   : > { %3182 = vmatprep.subr.mxu1 %v5768_v29  ;;  %3153 = vmatprep.subr.mxu0 %v5768_v29 }
 0x1e9   : > { %v1263_v34 = vpop.f32.mrf.mxu1  ;;  %3183 = vmatpush3.msra.mxu1 %v2161_v26  ;;  %3154 = vmatpush3.msra.mxu0 %v2987_v52 }
 0x1ea   : > { %3184 = vmatprep.subr.mxu1 %v5768_v29  ;;  %3155 = vmatprep.subr.mxu0 %v5768_v29 }
 0x1eb   : > { %3185 = vmatpush3.msra.mxu1 %v2160_v33  ;;  %3156 = vmatpush3.msra.mxu0 %v2986_v31 }
 0x1ec   : > { %3186 = vmatprep.subr.mxu1 %v5768_v29  ;;  %3157 = vmatprep.subr.mxu0 %v5768_v29 }
 0x1ed   : > { %3187 = vmatpush3.msra.mxu1 %v2159_v40  ;;  %3158 = vmatpush3.msra.mxu0 %v2985_v48 }
 0x1ee   : > { %3188 = vmatprep.subr.mxu1 %v5768_v29  ;;  %3159 = vmatprep.subr.mxu0 %v5768_v29 }
 0x1ef   : > { %3189 = vmatpush3.msra.mxu1 %v2158_v49  ;;  %3160 = vmatpush3.msra.mxu0 %v2984_v37 }
 0x1f0   : > { %3190 = vmatprep.subr.mxu1 %v5768_v29  ;;  %3161 = vmatprep.subr.mxu0 %v5768_v29 }
 0x1f1   : > { %3191 = vmatpush3.msra.mxu1 %v2157_v44  ;;  %3162 = vmatpush3.msra.mxu0 %v2983_v43 }
 0x1f2   : > { %3192 = vmatprep.subr.mxu1 %v5768_v29  ;;  %3163 = vmatprep.subr.mxu0 %v5768_v29 }
 0x1f3   : > { %3193 = vmatpush3.msra.mxu1 %v2156_v45  ;;  %3164 = vmatpush3.msra.mxu0 %v2982_v53 }
 0x1f4   : > { %3194 = vmatprep.subr.mxu1 %v5768_v29  ;;  %3165 = vmatprep.subr.mxu0 %v5768_v29 }
 0x1f5   : > { %3195 = vmatpush3.msra.mxu1 %v2155_v47  ;;  %3167 = vmatprep.mubr.msk.f32.mxu0 %vm3438_vm2, %v5768_v29 }
 0x1f6   : > { %3196 = vmatprep.subr.mxu1 %v5768_v29  ;;  %3166 = vmatpush3.msra.mxu0 %v2981_v42 }
 0x1f7   : > { %3197 = vmatpush3.msra.mxu1 %v2154_v25  ;;  %3205 = vmatprep.subr.mxu0 %v5768_v29 }
 0x1f8   : > { %3198 = vmatprep.subr.mxu1 %v5768_v29 }
 0x1f9   : > { %3199 = vmatpush3.msra.mxu1 %v2153_v19 }
 0x1fa   : > { %3200 = vmatprep.subr.mxu1 %v5768_v29 }
 0x1fb   : > { %3201 = vmatpush3.msra.mxu1 %v2152_v46 }
 0x1fc   : > { %3240 = vmatprep.subr.mxu1 %v5768_v29 }
 0x1fd   : > { %v5203_v59 = vpop.f32.mrf.mxu0  ;;  %v5331_v54 = vpop.f32.mrf.mxu1 }
 0x1ff   : > { %v5207_v38 = vpop.f32.mrf.mxu0  ;;  %v5348_v39 = vpop.f32.mrf.mxu1 }
 0x202   : > { %v5212_v63 = vpop.f32.mrf.mxu0 }
 0x204   : > { %v5218_v1 = vpop.f32.mrf.mxu0 }
 0x207   : > { %v1166_v12 = vpop.f32.mrf.mxu0 }
 0x208   : > { %v5241_v55 = vadd.f32 %v1255_v9, %v1166_v12 }
 0x209   : > { %v1168_v17 = vpop.f32.mrf.mxu0 }
 0x20a   : > { %v5251_v20 = vadd.f32 %v1257_v5, %v1168_v17 }
 0x20c   : > { %v1172_v27 = vpop.f32.mrf.mxu0 }
 0x20d   : > { %v5261_v30 = vadd.f32 %v1261_v13, %v1172_v27 }
 0x20e   : > { %v1174_v35 = vpop.f32.mrf.mxu0 }
 0x20f   : > { %5780 = vst [vmem:[#allocation5_spill] sm:$0xff] %v5261_v30  ;;  %v5271_v51 = vadd.f32 %v1263_v34, %v1174_v35 }
 0x211   : > { %5781 = vst [vmem:[#allocation6_spill] sm:$0xff] %v5271_v51 }
 0x212   : > { %v5358_v11 = vpop.f32.mrf.mxu1 }
 0x214   : > { %v1429_v8 = vpop.f32.mrf.mxu1 }
 0x217   : > { %v1433_v3 = vpop.f32.mrf.mxu1 }
 0x219   : > { %v1435_v23 = vpop.f32.mrf.mxu1 }
 0x21c   : > { %v1439_v2 = vpop.f32.mrf.mxu1 }
 0x21e   : > { %v5365_v6 = vpop.f32.mrf.mxu1 }
 0x224   : > { %v5356_v7 = vpop.f32.mrf.mxu0 }
 0x225   : > { %v1640_v10 = vpop.f32.mrf.mxu1 }
 0x226   : > { %v1334_v58 = vpop.f32.mrf.mxu0 }
 0x227   : > { %v1642_v12 = vpop.f32.mrf.mxu1 }
 0x22a   : > { %v5361_v60 = vpop.f32.mrf.mxu0 }
 0x22b   : > { %v5367_v16 = vpop.f32.mrf.mxu1 }
 0x22c   : > { %v1340_v61 = vpop.f32.mrf.mxu0 }
 0x22d   : > { %v1648_v14 = vpop.f32.mrf.mxu1 }
 0x230   : > { %v1344_v41 = vpop.f32.mrf.mxu0 }
 0x231   : > { %v1434_v57 = vadd.f32 %v1433_v3, %v1344_v41  ;;  %v1652_v17 = vpop.f32.mrf.mxu1 }
 0x232   : > { %v1346_v9 = vpop.f32.mrf.mxu0 }
 0x233   : > { %v1436_v0 = vadd.f32 %v1435_v23, %v1346_v9  ;;  %v1654_v15 = vpop.f32.mrf.mxu1  ;;  %v1667_v53 = vadd.f32 %v1652_v17, %v1434_v57  ;;  %v1422_v57 = vadd.f32 %v5331_v54, %v5356_v7  ;;  %v1244_v17 = vadd.f32 %v5197_v18, %v5203_v59 }
 0x234   : > { %v1252_v54 = vadd.f32 %v5205_v62, %v5218_v1 }
 0x235   : > { %v1350_v4 = vpop.f32.mrf.mxu0  ;;  %v1668_v42 = vadd.f32 %v1654_v15, %v1436_v0  ;;  %v1430_v0 = vadd.f32 %v1429_v8, %v1340_v61  ;;  %v1246_v15 = vadd.f32 %v5199_v22, %v5207_v38 }
 0x236   : > { %v5363_v5 = vadd.f32 %v1439_v2, %v1350_v4 }
 0x237   : > { %v5373_v21 = vpop.f32.mrf.mxu0  ;;  %v1666_v7 = vadd.f32 %v1648_v14, %v1430_v0  ;;  %v5788_v0 = vld [vmem:[#allocation6_spill] sm:$0xff] }
 0x239   : > { %v5369_v56 = vpop.f32.mrf.mxu1 }
 0x23b   : > { %v5371_v13 = vpop.f32.mrf.mxu1 }
 0x24c   : > { %v1543_v27 = vpop.f32.mrf.mxu0 }
 0x24d   : > { %v1867_v26 = vpop.f32.mrf.mxu1 }
 0x24e   : > { %v1545_v33 = vpop.f32.mrf.mxu0 }
 0x24f   : > { %v1869_v24 = vpop.f32.mrf.mxu1 }
 0x252   : > { %v1549_v35 = vpop.f32.mrf.mxu0 }
 0x253   : > { %v1873_v34 = vpop.f32.mrf.mxu1 }
 0x254   : > { %v1551_v40 = vpop.f32.mrf.mxu0 }
 0x255   : > { %v1875_v36 = vpop.f32.mrf.mxu1 }
 0x258   : > { %v5375_v49 = vpop.f32.mrf.mxu0 }
 0x259   : > { %v1879_v28 = vpop.f32.mrf.mxu1 }
 0x25a   : > { %v1557_v44 = vpop.f32.mrf.mxu0  ;;  %v1894_v41 = vadd.f32 %v1879_v28, %v1667_v53 }
 0x25b   : > { %v1881_v50 = vpop.f32.mrf.mxu1 }
 0x25c   : > { %v1895_v23 = vadd.f32 %v1881_v50, %v1668_v42  ;;  %v1428_v50 = vadd.f32 %v5358_v11, %v5361_v60  ;;  %v1663_v42 = vadd.f32 %v1640_v10, %v1422_v57  ;;  %v1569_v60 = vadd.f32 %v1551_v40, %v1252_v54 }
 0x25e   : > { %v5379_v45 = vpop.f32.mrf.mxu0  ;;  %v1890_v59 = vadd.f32 %v1867_v26, %v1663_v42  ;;  %v1665_v61 = vadd.f32 %v5367_v16, %v1428_v50  ;;  %v1570_v16 = vadd.f32 %v5375_v49, %v5241_v55  ;;  %v1669_v49 = vadd.f32 %v5369_v56, %v5363_v5 }
 0x25f   : > { %v5377_v52 = vpop.f32.mrf.mxu1  ;;  %5783 = vst [vmem:[#allocation8_spill] sm:$0xff] %v5379_v45  ;;  %v1424_v45 = vadd.f32 %v5348_v39, %v1334_v58  ;;  %v1567_v39 = vadd.f32 %v1545_v33, %v1246_v15 }
 0x260   : > { %5782 = vst [vmem:[#allocation7_spill] sm:$0xff] %v5377_v52  ;;  %v5383_v47 = vpop.f32.mrf.mxu0 }
 0x261   : > { %v5381_v31 = vpop.f32.mrf.mxu1  ;;  %5785 = vst [vmem:[#allocation10_spill] sm:$0xff] %v5383_v47  ;;  %v1664_v28 = vadd.f32 %v1642_v12, %v1424_v45  ;;  %v1893_v12 = vadd.f32 %v1875_v36, %v1666_v7  ;;  %v5415_v36 = vld [vmem:[%s5729_s4] ss:$0 sm:$0xff] }
 0x262   : > { %5784 = vst [vmem:[#allocation9_spill] sm:$0xff] %v5381_v31 }
 0x263   : > { %v1891_v58 = vadd.f32 %v1869_v24, %v1664_v28 }
 0x269   : > { %v5790_v15 = vld [vmem:[#allocation9_spill] sm:$0xff] }
 0x274   : > { %v1770_v25 = vpop.f32.mrf.mxu0 }
 0x275   : > { %v2094_v48 = vpop.f32.mrf.mxu1 }
 0x276   : > { %v1772_v43 = vpop.f32.mrf.mxu0 }
 0x277   : > { %v2096_v37 = vpop.f32.mrf.mxu1  ;;  %v1794_v22 = vadd.f32 %v1772_v43, %v1567_v39  ;;  %v3028_v39 = vld [vmem:[%s5730_s5 + $0x1f8] sm:$0xff] }
 0x278   : > { %v1776_v9 = vpop.f32.mrf.mxu0  ;;  %v2118_v38 = vadd.f32 %v2096_v37, %v1891_v58  ;;  %v5791_v58 = vld [vmem:[#allocation7_spill] sm:$0xff] }
 0x279   : > { %v2100_v19 = vpop.f32.mrf.mxu1  ;;  %v1896_v5 = vadd.f32 %v5791_v58, %v1669_v49  ;;  %v3013_v49 = vld [vmem:[%s5730_s5 + $0x180] sm:$0xff]  ;;  %v2513_v58 = vld [vmem:[%s5732_s7 + $0x18] sm:$0xff] }
 0x27a   : > { %v1778_v52 = vpop.f32.mrf.mxu0 }
 0x27b   : > { %v2102_v46 = vpop.f32.mrf.mxu1  ;;  %v1796_v26 = vadd.f32 %v1778_v52, %v1569_v60 }
 0x27c   : > { %v1782_v47 = vpop.f32.mrf.mxu0  ;;  %v2120_v45 = vadd.f32 %v2102_v46, %v1893_v12  ;;  %v3026_v12 = vld [vmem:[%s5730_s5 + $0x1e8] sm:$0xff] }
 0x27d   : > { %v2106_v3 = vpop.f32.mrf.mxu1  ;;  %v1797_v43 = vadd.f32 %v1782_v47, %v1570_v16  ;;  %v3020_v16 = vld [vmem:[%s5730_s5 + $0x1b8] sm:$0xff] }
 0x27e   : > { %v5385_v4 = vadd.f32 %v2106_v3, %v1894_v41  ;;  %v1784_v51 = vpop.f32.mrf.mxu0  ;;  %v1566_v3 = vadd.f32 %v1543_v27, %v1244_v17  ;;  %v1250_v41 = vadd.f32 %v5201_v32, %v5212_v63  ;;  %v2117_v27 = vadd.f32 %v2094_v48, %v1890_v59 }
 0x27f   : > { %v2108_v2 = vpop.f32.mrf.mxu1  ;;  %v1442_v32 = vadd.f32 %v5365_v6, %v5373_v21  ;;  %v1892_v63 = vadd.f32 %v1873_v34, %v1665_v61  ;;  %v5792_v61 = vmov 0.0  }
 0x280   : > { %v5387_v29 = vadd.f32 %v2108_v2, %v1895_v23  ;;  %v5392_v30 = vpop.f32.mrf.mxu0  ;;  %v1793_v8 = vadd.f32 %v1770_v25, %v1566_v3  ;;  %v1568_v11 = vadd.f32 %v1549_v35, %v1250_v41  ;;  %v2129_v14 = vmax.f32 %v2117_v27, %v2118_v38  ;;  %v5787_v2 = vld [vmem:[#allocation8_spill] sm:$0xff] }
 0x281   : > { %v1571_v35 = vadd.f32 %v1557_v44, %v5251_v20  ;;  %v2112_v40 = vpop.f32.mrf.mxu1  ;;  %v2119_v6 = vadd.f32 %v2100_v19, %v1892_v63  ;;  %v1670_v52 = vadd.f32 %v5371_v13, %v1442_v32  ;;  %v5786_v44 = vld [vmem:[#allocation5_spill] sm:$0xff]  ;;  %v5789_v19 = vld [vmem:[#allocation10_spill] sm:$0xff]  ;;  %v3009_v63 = vld [vmem:[%s5730_s5 + $0x160] sm:$0xff] }
 0x282   : > { %v2131_v31 = vmax.f32 %v5385_v4, %v5387_v29  ;;  %v1790_v53 = vpop.f32.mrf.mxu0  ;;  %v1795_v62 = vadd.f32 %v1776_v9, %v1568_v11  ;;  %v1572_v57 = vadd.f32 %v5787_v2, %v5786_v44  ;;  %v1573_v17 = vadd.f32 %v5789_v19, %v5788_v0  ;;  %v3011_v29 = vld [vmem:[%s5730_s5 + $0x170] sm:$0xff]  ;;  %v3024_v32 = vld [vmem:[%s5730_s5 + $0x1d8] sm:$0xff]  ;;  %v2997_v0 = vld [vmem:[%s5730_s5 + $0x100] sm:$0xff] }
 0x283   : > { %v2130_v23 = vmax.f32 %v2119_v6, %v2120_v45  ;;  %v1798_v9 = vadd.f32 %v1784_v51, %v1571_v35  ;;  %v1897_v28 = vadd.f32 %v5790_v15, %v1670_v52  ;;  %v2114_v50 = vpop.f32.mrf.mxu1  ;;  %v3021_v45 = vld [vmem:[%s5730_s5 + $0x1c0] sm:$0xff]  ;;  %v3018_v6 = vld [vmem:[%s5730_s5 + $0x1a8] sm:$0xff]  ;;  %v3016_v52 = vld [vmem:[%s5730_s5 + $0x198] sm:$0xff] }
 0x284   : > { %v1799_v56 = vadd.f32 %v5392_v30, %v1572_v57  ;;  %v1800_v54 = vadd.f32 %v1790_v53, %v1573_v17  ;;  %v3005_v35 = vld [vmem:[%s5730_s5 + $0x140] sm:$0xff]  ;;  %v2998_v57 = vld [vmem:[%s5730_s5 + $0x108] sm:$0xff]  ;;  %v2524_v19 = vld [vmem:[%s5732_s7 + $0x70] sm:$0xff] }
 0x285   : > { %v2124_v7 = vadd.f32 %v2114_v50, %v1897_v28  ;;  %v2523_v17 = vld [vmem:[%s5732_s7 + $0x68] sm:$0xff]  ;;  %v2522_v15 = vld [vmem:[%s5732_s7 + $0x60] sm:$0xff]  ;;  %v2521_v28 = vld [vmem:[%s5732_s7 + $0x58] sm:$0xff] }
 0x286   : > { %v2520_v50 = vld [vmem:[%s5732_s7 + $0x50] sm:$0xff] }
 0x294   : > { %v1997_v18 = vpop.f32.mrf.mxu0 }
 0x295   : > { %v2020_v24 = vadd.f32 %v1997_v18, %v1793_v8  ;;  %v3027_v8 = vld [vmem:[%s5730_s5 + $0x1f0] sm:$0xff] }
 0x296   : > { %v1999_v10 = vpop.f32.mrf.mxu0 }
 0x297   : > { %v2021_v33 = vadd.f32 %v1999_v10, %v1794_v22  ;;  %v2123_v22 = vadd.f32 %v2112_v40, %v1896_v5  ;;  %v3012_v10 = vld [vmem:[%s5730_s5 + $0x178] sm:$0xff]  ;;  %v3019_v40 = vld [vmem:[%s5730_s5 + $0x1b0] sm:$0xff] }
 0x298   : > { %v2003_v1 = vpop.f32.mrf.mxu0  ;;  %v2512_v5 = vld [vmem:[%s5732_s7 + $0x10] sm:$0xff] }
 0x299   : > { %v2125_v25 = vmax.f32 %v2020_v24, %v2021_v33  ;;  %v2022_v34 = vadd.f32 %v2003_v1, %v1795_v62  ;;  %v2132_v27 = vmax.f32 %v2123_v22, %v2124_v7  ;;  %v3010_v33 = vld [vmem:[%s5730_s5 + $0x168] sm:$0xff]  ;;  %v3023_v62 = vld [vmem:[%s5730_s5 + $0x1d0] sm:$0xff]  ;;  %v3008_v1 = vld [vmem:[%s5730_s5 + $0x158] sm:$0xff] }
 0x29a   : > { %v2005_v48 = vpop.f32.mrf.mxu0  ;;  %v2616_v7 = vld [vmem:[%s5734_s9 + $0x48] sm:$0xff] }
 0x29b   : > { %v2133_v21 = vmax.f32 %v2125_v25, %v2129_v14  ;;  %v2023_v37 = vadd.f32 %v2005_v48, %v1796_v26  ;;  %v3022_v14 = vld [vmem:[%s5730_s5 + $0x1c8] sm:$0xff]  ;;  %v3007_v26 = vld [vmem:[%s5730_s5 + $0x150] sm:$0xff]  ;;  %v3004_v48 = vld [vmem:[%s5730_s5 + $0x138] sm:$0xff] }
 0x29c   : > { %v2009_v46 = vpop.f32.mrf.mxu0  ;;  %v3006_v25 = vld [vmem:[%s5730_s5 + $0x148] sm:$0xff] }
 0x29d   : > { %v2144_v55 = vadd.f32 %v5415_v36, %v2133_v21  ;;  %v2126_v20 = vmax.f32 %v2022_v34, %v2023_v37  ;;  %v2024_v3 = vadd.f32 %v2009_v46, %v1797_v43  ;;  %v3003_v21 = vld [vmem:[%s5730_s5 + $0x130] sm:$0xff]  ;;  %v3017_v34 = vld [vmem:[%s5730_s5 + $0x1a0] sm:$0xff]  ;;  %v3002_v37 = vld [vmem:[%s5730_s5 + $0x128] sm:$0xff] }
 0x29e   : > { %v2011_v13 = vpop.f32.mrf.mxu0  ;;  %v3001_v43 = vld [vmem:[%s5730_s5 + $0x120] sm:$0xff]  ;;  %v3015_v46 = vld [vmem:[%s5730_s5 + $0x190] sm:$0xff]  ;;  %v2612_v22 = vld [vmem:[%s5734_s9 + $0x28] sm:$0xff] }
 0x29f   : > { %v2148_v47 = vmax.f32 %v2144_v55, 0.0  ;;  %v2134_v42 = vmax.f32 %v2126_v20, %v2130_v23  ;;  %v2025_v51 = vadd.f32 %v2011_v13, %v1798_v9  ;;  %v3000_v9 = vld [vmem:[%s5730_s5 + $0x118] sm:$0xff]  ;;  %v3014_v55 = vld [vmem:[%s5730_s5 + $0x188] sm:$0xff]  ;;  %v2999_v20 = vld [vmem:[%s5730_s5 + $0x110] sm:$0xff] }
 0x2a0   : > { %v2015_v41 = vpop.f32.mrf.mxu0  ;;  %v2519_v13 = vld [vmem:[%s5732_s7 + $0x48] sm:$0xff] }
 0x2a1   : > { %v2145_v18 = vadd.f32 %v5415_v36, %v2134_v42  ;;  %v2127_v59 = vmax.f32 %v2024_v3, %v2025_v51  ;;  %3203 = vmatmul.mubr.f32.vlgmr.msra.gmra.mxu1 %v2148_v47  ;;  %v2026_v53 = vadd.f32 %v2015_v41, %v1799_v56  ;;  %v2518_v47 = vld [vmem:[%s5732_s7 + $0x40] sm:$0xff]  ;;  %v2517_v42 = vld [vmem:[%s5732_s7 + $0x38] sm:$0xff]  ;;  %v2516_v3 = vld [vmem:[%s5732_s7 + $0x30] sm:$0xff] }
 0x2a2   : > { %3241 = vmatpush3.msra.mxu1 %v3028_v39  ;;  %v2017_v38 = vpop.f32.mrf.mxu0  ;;  %3272 = vmatprep.mubr.msk.f32.mxu1 %vm3438_vm2, %v5792_v61  ;;  %v2515_v51 = vld [vmem:[%s5732_s7 + $0x28] sm:$0xff]  ;;  %v2514_v39 = vld [vmem:[%s5732_s7 + $0x20] sm:$0xff] }
 0x2a3   : > { %v2149_v11 = vmax.f32 %v2145_v18, 0.0  ;;  %v5440_v30 = vmax.f32 %v2127_v59, %v2131_v31  ;;  %v2027_v60 = vadd.f32 %v2017_v38, %v1800_v54  ;;  %3242 = vmatprep.subr.mxu1 %v5792_v61  ;;  %v3025_v31 = vld [vmem:[%s5730_s5 + $0x1e0] sm:$0xff]  ;;  %v2511_v56 = vld [vmem:[%s5732_s7 + $0x8] sm:$0xff]  ;;  %v2617_v54 = vld [vmem:[%s5734_s9 + $0x50] sm:$0xf] }
 0x2a4   : > { %3243 = vmatpush3.msra.mxu1 %v3027_v8  ;;  %v2510_v41 = vld [vmem:[%s5732_s7] sm:$0xff]  ;;  %v2614_v59 = vld [vmem:[%s5734_s9 + $0x38] sm:$0xff]  ;;  %v2613_v8 = vld [vmem:[%s5734_s9 + $0x30] sm:$0xff] }
 0x2a5   : > { %v2128_v24 = vmax.f32 %v2026_v53, %v2027_v60  ;;  %3244 = vmatprep.subr.mxu1 %v5792_v61  ;;  %3168 = vmatmul.mubr.f32.vlgmr.msra.gmra.mxu0 %v2149_v11  ;;  %v2146_v44 = vadd.f32 %v5415_v36, %v5440_v30  ;;  %v2615_v18 = vld [vmem:[%s5734_s9 + $0x40] sm:$0xff]  ;;  %v2610_v11 = vld [vmem:[%s5734_s9 + $0x18] sm:$0xff] }
 0x2a6   : > { %3206 = vmatpush3.msra.mxu0 %v3012_v10  ;;  %3245 = vmatpush3.msra.mxu1 %v3026_v12  ;;  %v2611_v38 = vld [vmem:[%s5734_s9 + $0x20] sm:$0xff] }
 0x2a7   : > { %v2136_v4 = vmax.f32 %v2128_v24, %v2132_v27  ;;  %3207 = vmatprep.subr.mxu0 %v5792_v61  ;;  %3246 = vmatprep.subr.mxu1 %v5792_v61 }
 0x2a8   : > { %3208 = vmatpush3.msra.mxu0 %v3011_v29  ;;  %3247 = vmatpush3.msra.mxu1 %v3025_v31 }
 0x2a9   : > { %3209 = vmatprep.subr.mxu0 %v5792_v61  ;;  %3248 = vmatprep.subr.mxu1 %v5792_v61  ;;  %v2147_v23 = vadd.f32 %v5415_v36, %v2136_v4  ;;  %v2150_v36 = vmax.f32 %v2146_v44, 0.0  ;;  %v3029_v4 = vld [vmem:[%s5731_s6] ss:$0 sm:$0xff] }
 0x2aa   : > { %3210 = vmatpush3.msra.mxu0 %v3010_v33  ;;  %3249 = vmatpush3.msra.mxu1 %v3024_v32 }
 0x2ab   : > { %3211 = vmatprep.subr.mxu0 %v5792_v61  ;;  %3250 = vmatprep.subr.mxu1 %v5792_v61  ;;  %v2151_v2 = vmax.f32 %v2147_v23, 0.0 }
 0x2ac   : > { %3212 = vmatpush3.msra.mxu0 %v3009_v63  ;;  %3251 = vmatpush3.msra.mxu1 %v3023_v62 }
 0x2ad   : > { %3213 = vmatprep.subr.mxu0 %v5792_v61  ;;  %3252 = vmatprep.subr.mxu1 %v5792_v61 }
 0x2ae   : > { %3214 = vmatpush3.msra.mxu0 %v3008_v1  ;;  %3253 = vmatpush3.msra.mxu1 %v3022_v14  ;;  %v2609_v1 = vld [vmem:[%s5734_s9 + $0x10] sm:$0xff]  ;;  %v2608_v14 = vld [vmem:[%s5734_s9 + $0x8] sm:$0xff] }
 0x2af   : > { %3215 = vmatprep.subr.mxu0 %v5792_v61  ;;  %3254 = vmatprep.subr.mxu1 %v5792_v61 }
 0x2b0   : > { %3216 = vmatpush3.msra.mxu0 %v3007_v26  ;;  %3255 = vmatpush3.msra.mxu1 %v3021_v45  ;;  %v2607_v26 = vld [vmem:[%s5734_s9] sm:$0xff] }
 0x2b1   : > { %3217 = vmatprep.subr.mxu0 %v5792_v61  ;;  %3256 = vmatprep.subr.mxu1 %v5792_v61  ;;  %v3030_v45 = vld [vmem:[%s5733_s8] ss:$0 sm:$0xff] }
 0x2b2   : > { %3218 = vmatpush3.msra.mxu0 %v3006_v25  ;;  %3257 = vmatpush3.msra.mxu1 %v3020_v16 }
 0x2b3   : > { %3219 = vmatprep.subr.mxu0 %v5792_v61  ;;  %3258 = vmatprep.subr.mxu1 %v5792_v61 }
 0x2b4   : > { %3220 = vmatpush3.msra.mxu0 %v3005_v35  ;;  %3259 = vmatpush3.msra.mxu1 %v3019_v40 }
 0x2b5   : > { %3221 = vmatprep.subr.mxu0 %v5792_v61  ;;  %3260 = vmatprep.subr.mxu1 %v5792_v61 }
 0x2b6   : > { %3222 = vmatpush3.msra.mxu0 %v3004_v48  ;;  %3261 = vmatpush3.msra.mxu1 %v3018_v6 }
 0x2b7   : > { %3223 = vmatprep.subr.mxu0 %v5792_v61  ;;  %3262 = vmatprep.subr.mxu1 %v5792_v61 }
 0x2b8   : > { %3224 = vmatpush3.msra.mxu0 %v3003_v21  ;;  %3263 = vmatpush3.msra.mxu1 %v3017_v34 }
 0x2b9   : > { %3225 = vmatprep.subr.mxu0 %v5792_v61  ;;  %3264 = vmatprep.subr.mxu1 %v5792_v61 }
 0x2ba   : > { %3226 = vmatpush3.msra.mxu0 %v3002_v37  ;;  %3265 = vmatpush3.msra.mxu1 %v3016_v52 }
 0x2bb   : > { %3227 = vmatprep.subr.mxu0 %v5792_v61  ;;  %3266 = vmatprep.subr.mxu1 %v5792_v61 }
 0x2bc   : > { %3228 = vmatpush3.msra.mxu0 %v3001_v43  ;;  %3267 = vmatpush3.msra.mxu1 %v3015_v46 }
 0x2bd   : > { %3229 = vmatprep.subr.mxu0 %v5792_v61  ;;  %3268 = vmatprep.subr.mxu1 %v5792_v61 }
 0x2be   : > { %3230 = vmatpush3.msra.mxu0 %v3000_v9  ;;  %3269 = vmatpush3.msra.mxu1 %v3014_v55 }
 0x2bf   : > { %3231 = vmatprep.subr.mxu0 %v5792_v61  ;;  %3270 = vmatprep.subr.mxu1 %v5792_v61 }
 0x2c0   : > { %3232 = vmatpush3.msra.mxu0 %v2999_v20  ;;  %3271 = vmatpush3.msra.mxu1 %v3013_v49 }
 0x2c1   : > { %3233 = vmatprep.subr.mxu0 %v5792_v61  ;;  %3273 = vmatmul.mubr.f32.vlgmr.msra.gmra.mxu1 %v2151_v2 }
 0x2c2   : > { %3234 = vmatpush3.msra.mxu0 %v2998_v57  ;;  %3237 = vmatprep.mubr.msk.f32.mxu0 %vm3438_vm2, %v5792_v61 }
 0x2c3   : > { %3235 = vmatprep.subr.mxu0 %v5792_v61  ;;  %3308 = vmatprep.subr.mxu1 %v5792_v61 }
 0x2c4   : > { %3236 = vmatpush3.msra.mxu0 %v2997_v0  ;;  %3330 = vmatprep.mubr.msk.f32.mxu1 %vm3438_vm2, %v5792_v61 }
 0x2c5   : > { %3238 = vmatmul.mubr.f32.vlgmr.msra.gmra.mxu0 %v2150_v36  ;;  %3275 = vmatprep.subr.mxu0 %v5792_v61 }
 0x2c6   : > { %3305 = vmatprep.mubr.msk.f32.mxu0 %vm3438_vm2, %v5792_v61  ;;  %3276 = vmatpush3.msra.mxu0 %v2524_v19 }
 0x2c7   : > { %3277 = vmatprep.subr.mxu0 %v5792_v61  ;;  %3309 = vmatpush3.msk.msra.mxu1 %vm452_vm0, %v2617_v54 }
 0x2c8   : > { %3278 = vmatpush3.msra.mxu0 %v2523_v17  ;;  %3310 = vmatprep.subr.mxu1 %v5792_v61 }
 0x2c9   : > { %3279 = vmatprep.subr.mxu0 %v5792_v61  ;;  %3311 = vmatpush3.msra.mxu1 %v2616_v7 }
 0x2ca   : > { %3280 = vmatpush3.msra.mxu0 %v2522_v15  ;;  %3312 = vmatprep.subr.mxu1 %v5792_v61 }
 0x2cb   : > { %3281 = vmatprep.subr.mxu0 %v5792_v61  ;;  %3313 = vmatpush3.msra.mxu1 %v2615_v18 }
 0x2cc   : > { %3282 = vmatpush3.msra.mxu0 %v2521_v28  ;;  %3314 = vmatprep.subr.mxu1 %v5792_v61 }
 0x2cd   : > { %3283 = vmatprep.subr.mxu0 %v5792_v61  ;;  %3315 = vmatpush3.msra.mxu1 %v2614_v59 }
 0x2ce   : > { %3284 = vmatpush3.msra.mxu0 %v2520_v50  ;;  %3316 = vmatprep.subr.mxu1 %v5792_v61 }
 0x2cf   : > { %3285 = vmatprep.subr.mxu0 %v5792_v61  ;;  %3317 = vmatpush3.msra.mxu1 %v2613_v8 }
 0x2d0   : > { %3286 = vmatpush3.msra.mxu0 %v2519_v13  ;;  %3318 = vmatprep.subr.mxu1 %v5792_v61 }
 0x2d1   : > { %3287 = vmatprep.subr.mxu0 %v5792_v61  ;;  %3319 = vmatpush3.msra.mxu1 %v2612_v22 }
 0x2d2   : > { %3288 = vmatpush3.msra.mxu0 %v2518_v47  ;;  %3320 = vmatprep.subr.mxu1 %v5792_v61 }
 0x2d3   : > { %3289 = vmatprep.subr.mxu0 %v5792_v61  ;;  %3321 = vmatpush3.msra.mxu1 %v2611_v38 }
 0x2d4   : > { %3290 = vmatpush3.msra.mxu0 %v2517_v42  ;;  %3322 = vmatprep.subr.mxu1 %v5792_v61 }
 0x2d5   : > { %3291 = vmatprep.subr.mxu0 %v5792_v61  ;;  %3323 = vmatpush3.msra.mxu1 %v2610_v11 }
 0x2d6   : > { %3292 = vmatpush3.msra.mxu0 %v2516_v3  ;;  %3324 = vmatprep.subr.mxu1 %v5792_v61 }
 0x2d7   : > { %3293 = vmatprep.subr.mxu0 %v5792_v61  ;;  %3325 = vmatpush3.msra.mxu1 %v2609_v1 }
 0x2d8   : > { %3294 = vmatpush3.msra.mxu0 %v2515_v51  ;;  %3326 = vmatprep.subr.mxu1 %v5792_v61 }
 0x2d9   : > { %3295 = vmatprep.subr.mxu0 %v5792_v61  ;;  %3327 = vmatpush3.msra.mxu1 %v2608_v14 }
 0x2da   : > { %3296 = vmatpush3.msra.mxu0 %v2514_v39  ;;  %3328 = vmatprep.subr.mxu1 %v5792_v61 }
 0x2db   : > { %3297 = vmatprep.subr.mxu0 %v5792_v61  ;;  %3329 = vmatpush3.msra.mxu1 %v2607_v26 }
 0x2dc   : > { %3298 = vmatpush3.msra.mxu0 %v2513_v58 }
 0x2dd   : > { %3299 = vmatprep.subr.mxu0 %v5792_v61 }
 0x2de   : > { %3300 = vmatpush3.msra.mxu0 %v2512_v5 }
 0x2df   : > { %3301 = vmatprep.subr.mxu0 %v5792_v61 }
 0x2e0   : > { %3302 = vmatpush3.msra.mxu0 %v2511_v56 }
 0x2e1   : > { %3303 = vmatprep.subr.mxu0 %v5792_v61  ;;  %v3032_v61 = vld [vmem:[%s5735_s10] ss:$0 sm:$0xff] }
 0x2e2   : > { %3304 = vmatpush3.msra.mxu0 %v2510_v41 }
 0x361   : > { %v2321_v30 = vpop.f32.mrf.mxu1 }
 0x363   : > { %v3204_v53 = vpop.f32.mrf.mxu1 }
 0x365   : > { %v2251_v60 = vpop.f32.mrf.mxu0 }
 0x366   : > { %v2322_v24 = vadd.f32 %v2321_v30, %v2251_v60 }
 0x367   : > { %v3169_v10 = vpop.f32.mrf.mxu0 }
 0x381   : > { %v2496_v12 = vpop.f32.mrf.mxu1 }
 0x383   : > { %v3274_v27 = vpop.f32.mrf.mxu1 }
 0x385   : > { %v2408_v29 = vpop.f32.mrf.mxu0 }
 0x386   : > { %v2412_v31 = vadd.f32 %v2408_v29, %v2322_v24 }
 0x387   : > { %v3239_v33 = vpop.f32.mrf.mxu0 }
 0x388   : > { %v2500_v32 = vadd.f32 %v2496_v12, %v2412_v31 }
 0x38a   : > { %v2508_v63 = vadd.f32 %v3029_v4, %v2500_v32 }
 0x38c   : > { %v2509_v62 = vmax.f32 %v2508_v63, 0.0 }
 0x38e   : > { %3306 = vmatmul.mubr.msk.f32.vlgmr.msra.gmra.mxu0 %vm2532_vm3, %v2509_v62 }
 0x44e   : > { %v2602_v25 = vpop.f32.mrf.mxu0 }
 0x44f   : > { %v2603_v16 = vadd.f32 %v3030_v45, %v2602_v25 }
 0x450   : > { %v3307_v35 = vpop.f32.mrf.mxu0 }
 0x451   : > { %v2606_v40 = vmax.f32 %v2603_v16, 0.0 }
 0x453   : > { %3331 = vmatmul.mubr.msk.f32.vlgmr.msra.gmra.mxu1 %vm2625_vm4, %v2606_v40 }
 0x513   : > { %v2698_v48 = vpop.f32.mrf.mxu1 }
 0x514   : > { %v2699_v6 = vadd.f32 %v3032_v61, %v2698_v48 }
 0x515   : > { %v3332_v21 = vpop.f32.mrf.mxu1 }
 0x516   : > { %2703 = vst.msk [vmem:[%s379_s29] sm:$0xff] %vm2702_vm5, %v2699_v6 }
 0x517   : > { %3388 = shalt.err (!%p3385_p3)
}
 0x518   : > { %s3389_s13 = scalar_lea.hbm %s5690_s16, 128  ;;  %s3393_s29 = scalar_lea.hbm %s5736_s11, 256 }
 0x519   : > { %p3390_p4 = scmp.ne.s32.totalorder %s5690_s16, %s3389_s13  ;;  %p3394_p9 = scmp.lt.s32.totalorder %s5690_s16, %s5736_s11 }
 0x51a   : > { %p3395_p10 = scmp.lt.s32.totalorder %s3393_s29, %s3389_s13 }
 0x51b   : > { %p3391_p7 = pnand %p3390_p4, %p3538_p5 }
 0x51c   : > { %p3396_p11 = por %p3395_p10, %p3394_p9 }
 0x51d   : > { %p3392_p8 = pneg %p3391_p7 }
 0x51f   : > { %p3397_p12 = pnand %p3396_p11, %p3392_p8 }
 0x521   : > { %3400 = shalt.err (!%p3397_p12)
}
 0x522   : > { %3334 = dma.vmem_to_hbm [thread:$0]  (%p3538_p5), %s2719_s25, 128, %s5690_s16, %s2705_s0  }
 0x523 PF: > { %p3340_p13 = scmp.ge.s32.totalorder %s3435_s20, 2  ;;  %s2730_s1 = sand.u32 1, %s3423_s17  }
 0x524   : > { %s2731_s21 = scalar_lea.sflag [#allocation3], %s2730_s1 }
 0x525   : > { %p3337_p0 = pnand %p3340_p13, %p3542_p6 }
 0x527   : > { %p3338_p1 = pneg %p3337_p0 }
 0x529   : > { %3418 = dma.done.wait (%p3338_p1), %s2731_s21, 128  }
 0x52a   : > { %3420 = vsyncadd (%p3338_p1), %s2731_s21, 4294967168  ;;  %p21_p2 = scmp.ge.s32.totalorder %s3525_s23, 4   ;;  %s5793_s17 = smov %s3427_s18 }
 0x52b   : > { %s5794_s18 = smov %s3431_s19  ;;  %s5795_s19 = smov %s3536_s26 }
 0x52c   : > { %s5796_s20 = smov %s3525_s23  ;;  %23 = sbr.rel (!%p21_p2) target bundleno = 6 (0x6), region = 109 }
 0x531   :  { %2736 = vsyncpa [#allocation3], 1 }
 0x532   :  { %2738 = vsyncpa [#allocation3 + $0x1], 1 }

</bundles_post_ra>
